<compile_context>
chip_gen: v7x
topology: tpu7x:2x2x1
jax: 0.10.0
libtpu: 0.0.40
codegen_flags: <defaults>
</compile_context>

<pallas_src>
import functools

import jax
import jax.numpy as jnp
from jax.experimental import pallas as pl
from jax.experimental.pallas import tpu as pltpu

# MXU input dtype (accumulation is always f32).  Set to jnp.float32 for exact
# parity with the f32 PyTorch reference.
_MXU_DTYPE = jnp.bfloat16
# Plain Python float (NOT a jax.Array) so the kernel does not capture a
# traced constant; same masking sentinel the PyTorch layer uses.
_NEG_LOGIT = -9e15

_TILE_ROWS = 128                     # query-row tile   (parallel grid axis)
_TILE_COLS = 128                     # neighbor-col tile (arbitrary / reduction axis)


def _mxu(x):
    return x.astype(_MXU_DTYPE)


def _row_tile(n):
    t = min(_TILE_ROWS, n)
    assert n % t == 0, "demo assumes node count divisible by the row tile"
    return t


def _col_tile(n):
    t = min(_TILE_COLS, n)
    assert n % t == 0, "demo assumes node count divisible by the col tile"
    return t


# ----------------------------------------------------------------------------
# Kernel: fused AE encoder + decoder (8 Linear layers in one call)
# ----------------------------------------------------------------------------
def _ae_kernel(x_ref,
               w_e1, b_e1, w_e2, b_e2, w_e3, b_e3, w_z, b_z,
               w_d1, b_d1, w_d2, b_d2, w_d3, b_d3, w_xb, b_xb,
               xbar_ref, h1_ref, h2_ref, h3_ref, z_ref):
    def dense(v, w_ref, b_ref, relu=True):
        y = jnp.dot(_mxu(v), _mxu(w_ref[...]),
                    preferred_element_type=jnp.float32) + b_ref[...]
        return jnp.maximum(y, 0.0) if relu else y

    h1 = dense(x_ref[...], w_e1, b_e1)
    h1_ref[...] = h1
    h2 = dense(h1, w_e2, b_e2)
    h2_ref[...] = h2
    h3 = dense(h2, w_e3, b_e3)
    h3_ref[...] = h3
    z = dense(h3, w_z, b_z, relu=False)
    z_ref[...] = z
    d1 = dense(z, w_d1, b_d1)
    d2 = dense(d1, w_d2, b_d2)
    d3 = dense(d2, w_d3, b_d3)
    xbar_ref[...] = dense(d3, w_xb, b_xb, relu=False)


def ae_forward(params, x):
    n, n_in = x.shape
    tr = _row_tile(n)
    names = ["enc_1", "enc_2", "enc_3", "z", "dec_1", "dec_2", "dec_3", "x_bar"]

    args = [x]
    in_specs = [pl.BlockSpec((tr, n_in), lambda i: (i, 0))]
    for nm in names:
        w = params[nm + "_w"]
        b = params[nm + "_b"].reshape(1, -1)
        args += [w, b]
        in_specs += [pl.BlockSpec(w.shape, lambda i: (0, 0)),
                     pl.BlockSpec(b.shape, lambda i: (0, 0))]

    width = {nm: params[nm + "_w"].shape[1] for nm in names}
    out_shapes = (
        jax.ShapeDtypeStruct((n, width["x_bar"]), jnp.float32),
        jax.ShapeDtypeStruct((n, width["enc_1"]), jnp.float32),
        jax.ShapeDtypeStruct((n, width["enc_2"]), jnp.float32),
        jax.ShapeDtypeStruct((n, width["enc_3"]), jnp.float32),
        jax.ShapeDtypeStruct((n, width["z"]), jnp.float32),
    )
    out_specs = tuple(pl.BlockSpec((tr, s.shape[1]), lambda i: (i, 0))
                      for s in out_shapes)

    return pl.pallas_call(
        _ae_kernel,
        out_shape=out_shapes,
        grid=(n // tr,),
        in_specs=in_specs,
        out_specs=out_specs,
        compiler_params=pltpu.CompilerParams(dimension_semantics=("parallel",)),
    )(*args)


# ----------------------------------------------------------------------------
# Kernel: GAT projection  (sigma blend + h = x@W + att = h@[a_self|a_neigh])
# ----------------------------------------------------------------------------
def _gat_proj_kernel(*refs, sigma, blend):
    if blend:
        x_ref, skip_ref, w_ref, a_ref, h_ref, att_ref = refs
        xb = (1.0 - sigma) * x_ref[...] + sigma * skip_ref[...]
    else:
        x_ref, w_ref, a_ref, h_ref, att_ref = refs
        xb = x_ref[...]
    h = jnp.dot(_mxu(xb), _mxu(w_ref[...]), preferred_element_type=jnp.float32)
    h_ref[...] = h
    # one (F_out, 2) matmul instead of two width-1 matmuls (a_self, a_neigh)
    att_ref[...] = jnp.dot(_mxu(h), _mxu(a_ref[...]),
                           preferred_element_type=jnp.float32)


def gat_project(x, w, a_cat, skip=None, sigma=0.5):
    n, f_in = x.shape
    f_out = w.shape[1]
    tr = _row_tile(n)
    row_spec = pl.BlockSpec((tr, f_in), lambda i: (i, 0))

    args = [x]
    in_specs = [row_spec]
    if skip is not None:
        args.append(skip)
        in_specs.append(row_spec)
    args += [w, a_cat]
    in_specs += [pl.BlockSpec(w.shape, lambda i: (0, 0)),
                 pl.BlockSpec(a_cat.shape, lambda i: (0, 0))]

    return pl.pallas_call(
        functools.partial(_gat_proj_kernel, sigma=float(sigma),
                          blend=skip is not None),
        out_shape=(jax.ShapeDtypeStruct((n, f_out), jnp.float32),
                   jax.ShapeDtypeStruct((n, 2), jnp.float32)),
        grid=(n // tr,),
        in_specs=in_specs,
        out_specs=(pl.BlockSpec((tr, f_out), lambda i: (i, 0)),
                   pl.BlockSpec((tr, 2), lambda i: (i, 0))),
        compiler_params=pltpu.CompilerParams(dimension_semantics=("parallel",)),
    )(*args)


# ----------------------------------------------------------------------------
# Kernel: flash-style masked-softmax aggregation  out = softmax_adj(e) @ h
# ----------------------------------------------------------------------------
def _gat_agg_kernel(att_row_ref, att_col_ref, h_ref, adj_ref, o_ref,
                    m_ref, l_ref, acc_ref, *, alpha, mode):
    j = pl.program_id(1)

    @pl.when(j == 0)
    def _():
        m_ref[...] = jnp.full_like(m_ref, -jnp.inf)
        l_ref[...] = jnp.zeros_like(l_ref)
        acc_ref[...] = jnp.zeros_like(acc_ref)

    # attention logits for this (row_tile, col_tile); everything f32
    e = att_row_ref[...][:, 0:1] + att_col_ref[...][:, 1:2].T          # (TR, TC)
    e = jnp.where(e > 0, e, alpha * e)                                 # LeakyReLU
    # NOTE: a row with zero neighbors would softmax over all -9e15 logits and
    # yield a uniform row (matching the dense masked softmax); self-loops in
    # the adjacency prevent this case.
    e = jnp.where(adj_ref[...] > 0, e, _NEG_LOGIT)                     # int8 mask

    m_prev = m_ref[...]
    m_new = jnp.maximum(m_prev, jnp.max(e, axis=1, keepdims=True))
    scale = jnp.exp(m_prev - m_new)
    p = jnp.exp(e - m_new)
    l_ref[...] = scale * l_ref[...] + jnp.sum(p, axis=1, keepdims=True)
    acc_ref[...] = scale * acc_ref[...] + jnp.dot(
        _mxu(p), _mxu(h_ref[...]), preferred_element_type=jnp.float32)
    m_ref[...] = m_new

    @pl.when(j == pl.num_programs(1) - 1)
    def _():
        out = acc_ref[...] * pl.reciprocal(l_ref[...], approx=True)
        if mode == "elu":                                              # concat=True
            out = jnp.where(out > 0, out, jnp.expm1(jnp.minimum(out, 0.0)))
        elif mode == "softmax":                                        # fused predict
            out = out - jnp.max(out, axis=1, keepdims=True)
            ex = jnp.exp(out)
            out = ex * pl.reciprocal(jnp.sum(ex, axis=1, keepdims=True),
                                     approx=True)
        o_ref[...] = out.astype(o_ref.dtype)


def gat_aggregate(h, att, adj_i8, *, alpha, mode):
    n, f_out = h.shape
    tr = _row_tile(n)
    tc = _col_tile(n)
    return pl.pallas_call(
        functools.partial(_gat_agg_kernel, alpha=float(alpha), mode=mode),
        out_shape=jax.ShapeDtypeStruct((n, f_out), jnp.float32),
        grid=(n // tr, n // tc),
        in_specs=[
            pl.BlockSpec((tr, 2), lambda i, j: (i, 0)),       # att, row role
            pl.BlockSpec((tc, 2), lambda i, j: (j, 0)),       # att, col role
            pl.BlockSpec((tc, f_out), lambda i, j: (j, 0)),   # neighbor features
            pl.BlockSpec((tr, tc), lambda i, j: (i, j)),      # int8 adjacency tile
        ],
        out_specs=pl.BlockSpec((tr, f_out), lambda i, j: (i, 0)),
        scratch_shapes=[
            pltpu.VMEM((tr, 1), jnp.float32),                 # running row-max
            pltpu.VMEM((tr, 1), jnp.float32),                 # running denom
            pltpu.VMEM((tr, f_out), jnp.float32),             # output accumulator
        ],
        compiler_params=pltpu.CompilerParams(
            dimension_semantics=("parallel", "arbitrary"),
            vmem_limit_bytes=32 * 1024 * 1024),
    )(att, att, h, adj_i8)


def gat_layer(x, adj_i8, w, a_cat, *, skip, sigma, alpha, mode):
    h, att = gat_project(x, w, a_cat, skip=skip, sigma=sigma)
    return gat_aggregate(h, att, adj_i8, alpha=alpha, mode=mode)


# ----------------------------------------------------------------------------
# Kernel: Student-t soft assignment q  (MXU form of the pairwise distances)
# ----------------------------------------------------------------------------
def _q_kernel(z_ref, mut_ref, o_ref, *, v):
    z = z_ref[...]                                         # (TR, n_z)
    mut = mut_ref[...]                                     # (n_z, K) -- pre-transposed
    z2 = jnp.sum(z * z, axis=1, keepdims=True)             # (TR, 1)
    mu2 = jnp.sum(mut * mut, axis=0, keepdims=True)        # (1, K)
    cross = jnp.dot(z, mut, preferred_element_type=jnp.float32)   # (TR, K)
    dist2 = jnp.maximum(z2 + mu2 - 2.0 * cross, 0.0)
    q = 1.0 / (1.0 + dist2 * (1.0 / v))
    exponent = (v + 1.0) / 2.0
    if exponent != 1.0:
        q = q ** exponent
    q = q * pl.reciprocal(jnp.sum(q, axis=1, keepdims=True), approx=True)
    o_ref[...] = q


def student_t_q(z, mu_t, v):
    n, nz = z.shape
    k = mu_t.shape[1]
    tr = _row_tile(n)
    return pl.pallas_call(
        functools.partial(_q_kernel, v=float(v)),
        out_shape=jax.ShapeDtypeStruct((n, k), jnp.float32),
        grid=(n // tr,),
        in_specs=[pl.BlockSpec((tr, nz), lambda i: (i, 0)),
                  pl.BlockSpec((nz, k), lambda i: (0, 0))],
        out_specs=pl.BlockSpec((tr, k), lambda i: (i, 0)),
        compiler_params=pltpu.CompilerParams(dimension_semantics=("parallel",)),
    )(z, mu_t)


# ----------------------------------------------------------------------------
# Parameter construction (deterministic, xavier-style)
# ----------------------------------------------------------------------------
def _xavier(key, shape):
    fan_in, fan_out = shape[0], shape[1]
    limit = jnp.sqrt(6.0 / (fan_in + fan_out))
    return jax.random.uniform(key, shape, jnp.float32, -limit, limit)


def init_params(key, dims):
    (n_enc_1, n_enc_2, n_enc_3, n_dec_1, n_dec_2, n_dec_3,
     n_input, n_z, n_clusters) = dims
    keys = iter(jax.random.split(key, 64))
    p = {}

    def lin(name, fi, fo):
        p[name + "_w"] = _xavier(next(keys), (fi, fo))
        p[name + "_b"] = jax.random.uniform(next(keys), (fo,), jnp.float32,
                                            -1.0 / jnp.sqrt(fi), 1.0 / jnp.sqrt(fi))

    # AE
    lin("enc_1", n_input, n_enc_1)
    lin("enc_2", n_enc_1, n_enc_2)
    lin("enc_3", n_enc_2, n_enc_3)
    lin("z", n_enc_3, n_z)
    lin("dec_1", n_z, n_dec_1)
    lin("dec_2", n_dec_1, n_dec_2)
    lin("dec_3", n_dec_2, n_dec_3)
    lin("x_bar", n_dec_3, n_input)

    # GAT layers: W (in, out) and the fused a = [a_self | a_neigh]  (out, 2)
    gat_dims = [(n_input, n_enc_1), (n_enc_1, n_enc_2), (n_enc_2, n_enc_3),
                (n_enc_3, n_z), (n_z, n_clusters)]
    for i, (fi, fo) in enumerate(gat_dims, start=1):
        p[f"gnn_{i}_w"] = _xavier(next(keys), (fi, fo))
        a_self = _xavier(next(keys), (fo, 1))
        a_neigh = _xavier(next(keys), (fo, 1))
        p[f"gnn_{i}_a"] = jnp.concatenate([a_self, a_neigh], axis=1)

    # cluster layer (xavier normal), stored transposed (n_z, K) for the q kernel
    std = jnp.sqrt(2.0 / (n_clusters + n_z))
    cluster = std * jax.random.normal(next(keys), (n_clusters, n_z), jnp.float32)
    p["cluster_t"] = cluster.T
    return p


# ----------------------------------------------------------------------------
# Full forward
# ----------------------------------------------------------------------------
def model_forward(params, x, adj_i8, v=1.0, alpha=0.2, sigma=0.5):
    # ---- AE (one fused kernel) ----
    x_bar, enc_h1, enc_h2, enc_h3, z = ae_forward(params, x)

    # ---- GAT stack (sigma blend fused into the projection kernel) ----
    h = gat_layer(x, adj_i8, params["gnn_1_w"], params["gnn_1_a"],
                  skip=None, sigma=sigma, alpha=alpha, mode="elu")
    h = gat_layer(h, adj_i8, params["gnn_2_w"], params["gnn_2_a"],
                  skip=enc_h1, sigma=sigma, alpha=alpha, mode="elu")
    h = gat_layer(h, adj_i8, params["gnn_3_w"], params["gnn_3_a"],
                  skip=enc_h2, sigma=sigma, alpha=alpha, mode="elu")
    h = gat_layer(h, adj_i8, params["gnn_4_w"], params["gnn_4_a"],
                  skip=enc_h3, sigma=sigma, alpha=alpha, mode="elu")
    # last layer: concat=False + fused row-softmax -> predict
    predict = gat_layer(h, adj_i8, params["gnn_5_w"], params["gnn_5_a"],
                        skip=z, sigma=sigma, alpha=alpha, mode="softmax")

    q = student_t_q(z, params["cluster_t"], v)
    return x_bar, q, predict, z


# ----------------------------------------------------------------------------
# Main
# ----------------------------------------------------------------------------
if __name__ == "__main__":
    # Small synthetic problem, sized to exercise the 2-D flash-style tiling.
    N = 256          # number of graph nodes  (grid: 2 row tiles x 2 col tiles)
    n_input = 64
    n_enc_1, n_enc_2, n_enc_3 = 128, 128, 64
    n_dec_1, n_dec_2, n_dec_3 = 64, 128, 128
    n_z = 32
    n_clusters = 8

    key = jax.random.PRNGKey(0)
    k_x, k_adj, k_p = jax.random.split(key, 3)

    x = jax.random.normal(k_x, (N, n_input), jnp.float32)

    # Random symmetric adjacency with self loops, stored as an int8 mask
    # (4x smaller than f32 in HBM/VMEM).
    rand = jax.random.uniform(k_adj, (N, N))
    adj = (rand < 0.05).astype(jnp.float32)
    adj = jnp.maximum(adj, adj.T)
    adj = jnp.maximum(adj, jnp.eye(N, dtype=jnp.float32))   # self loops
    adj_i8 = adj.astype(jnp.int8)

    params = init_params(
        k_p, (n_enc_1, n_enc_2, n_enc_3, n_dec_1, n_dec_2, n_dec_3,
              n_input, n_z, n_clusters))

    x_bar, q, predict, z = model_forward(params, x, adj_i8,
                                         v=1.0, alpha=0.2, sigma=0.5)
    jax.block_until_ready((x_bar, q, predict, z))

    assert x_bar.shape == (N, n_input)
    assert q.shape == (N, n_clusters)
    assert predict.shape == (N, n_clusters)
    assert z.shape == (N, n_z)
    assert bool(jnp.all(jnp.isfinite(x_bar)))
    assert bool(jnp.all(jnp.isfinite(predict)))
    assert bool(jnp.all(jnp.isfinite(q)))
    # approx-reciprocal (EUP vrcp) normalization => relaxed tolerance
    assert bool(jnp.allclose(jnp.sum(q, axis=1), 1.0, atol=5e-3))
    assert bool(jnp.allclose(jnp.sum(predict, axis=1), 1.0, atol=5e-3))

    print("KERNEL_OK")
</pallas_src>

<mosaic_0001>
module attributes {stable_mosaic.version = 11 : i64} {
  func.func @_ae_kernel(%arg0: i32, %arg1: memref<128x64xf32, #tpu.memory_space<vmem>>, %arg2: memref<64x128xf32, #tpu.memory_space<vmem>>, %arg3: memref<1x128xf32, #tpu.memory_space<vmem>>, %arg4: memref<128x128xf32, #tpu.memory_space<vmem>>, %arg5: memref<1x128xf32, #tpu.memory_space<vmem>>, %arg6: memref<128x64xf32, #tpu.memory_space<vmem>>, %arg7: memref<1x64xf32, #tpu.memory_space<vmem>>, %arg8: memref<64x32xf32, #tpu.memory_space<vmem>>, %arg9: memref<1x32xf32, #tpu.memory_space<vmem>>, %arg10: memref<32x64xf32, #tpu.memory_space<vmem>>, %arg11: memref<1x64xf32, #tpu.memory_space<vmem>>, %arg12: memref<64x128xf32, #tpu.memory_space<vmem>>, %arg13: memref<1x128xf32, #tpu.memory_space<vmem>>, %arg14: memref<128x128xf32, #tpu.memory_space<vmem>>, %arg15: memref<1x128xf32, #tpu.memory_space<vmem>>, %arg16: memref<128x64xf32, #tpu.memory_space<vmem>>, %arg17: memref<1x64xf32, #tpu.memory_space<vmem>>, %arg18: memref<128x64xf32, #tpu.memory_space<vmem>>, %arg19: memref<128x128xf32, #tpu.memory_space<vmem>>, %arg20: memref<128x128xf32, #tpu.memory_space<vmem>>, %arg21: memref<128x64xf32, #tpu.memory_space<vmem>>, %arg22: memref<128x32xf32, #tpu.memory_space<vmem>>) attributes {dimension_semantics = [#tpu.dimension_semantics<parallel>], iteration_bounds = array<i64: 2>, scalar_prefetch = 0 : i64, scratch_operands = 0 : i64, tpu.core_type = #tpu.core_type<tc>, window_params = [{transform_indices = @transform_0, window_bounds = array<i64: 128, 64>}, {pipeline_mode = #tpu.pipeline_mode<synchronous>, transform_indices = @transform_1, window_bounds = array<i64: 64, 128>}, {pipeline_mode = #tpu.pipeline_mode<synchronous>, transform_indices = @transform_2, window_bounds = array<i64: 1, 128>}, {pipeline_mode = #tpu.pipeline_mode<synchronous>, transform_indices = @transform_3, window_bounds = array<i64: 128, 128>}, {pipeline_mode = #tpu.pipeline_mode<synchronous>, transform_indices = @transform_4, window_bounds = array<i64: 1, 128>}, {pipeline_mode = #tpu.pipeline_mode<synchronous>, transform_indices = @transform_5, window_bounds = array<i64: 128, 64>}, {pipeline_mode = #tpu.pipeline_mode<synchronous>, transform_indices = @transform_6, window_bounds = array<i64: 1, 64>}, {pipeline_mode = #tpu.pipeline_mode<synchronous>, transform_indices = @transform_7, window_bounds = array<i64: 64, 32>}, {pipeline_mode = #tpu.pipeline_mode<synchronous>, transform_indices = @transform_8, window_bounds = array<i64: 1, 32>}, {pipeline_mode = #tpu.pipeline_mode<synchronous>, transform_indices = @transform_9, window_bounds = array<i64: 32, 64>}, {pipeline_mode = #tpu.pipeline_mode<synchronous>, transform_indices = @transform_10, window_bounds = array<i64: 1, 64>}, {pipeline_mode = #tpu.pipeline_mode<synchronous>, transform_indices = @transform_11, window_bounds = array<i64: 64, 128>}, {pipeline_mode = #tpu.pipeline_mode<synchronous>, transform_indices = @transform_12, window_bounds = array<i64: 1, 128>}, {pipeline_mode = #tpu.pipeline_mode<synchronous>, transform_indices = @transform_13, window_bounds = array<i64: 128, 128>}, {pipeline_mode = #tpu.pipeline_mode<synchronous>, transform_indices = @transform_14, window_bounds = array<i64: 1, 128>}, {pipeline_mode = #tpu.pipeline_mode<synchronous>, transform_indices = @transform_15, window_bounds = array<i64: 128, 64>}, {pipeline_mode = #tpu.pipeline_mode<synchronous>, transform_indices = @transform_16, window_bounds = array<i64: 1, 64>}, {transform_indices = @transform_17, window_bounds = array<i64: 128, 64>}, {transform_indices = @transform_18, window_bounds = array<i64: 128, 128>}, {transform_indices = @transform_19, window_bounds = array<i64: 128, 128>}, {transform_indices = @transform_20, window_bounds = array<i64: 128, 64>}, {transform_indices = @transform_21, window_bounds = array<i64: 128, 32>}]} {
    %c0 = arith.constant 0 : index
    %c0_0 = arith.constant 0 : index
    %0 = vector.load %arg1[%c0, %c0_0] : memref<128x64xf32, #tpu.memory_space<vmem>>, vector<128x64xf32>
    %1 = arith.truncf %0 : vector<128x64xf32> to vector<128x64xbf16>
    %c0_1 = arith.constant 0 : index
    %c0_2 = arith.constant 0 : index
    %2 = vector.load %arg2[%c0_1, %c0_2] : memref<64x128xf32, #tpu.memory_space<vmem>>, vector<64x128xf32>
    %3 = arith.truncf %2 : vector<64x128xf32> to vector<64x128xbf16>
    %cst = arith.constant dense<0.000000e+00> : vector<128x128xf32>
    %4 = tpu.matmul %1, %3, %cst {dimension_numbers = #tpu.dot_dimension_numbers<[1], [0], [0], [1], [0, 0, 1, 1], [], []>} : vector<128x64xbf16>, vector<64x128xbf16>, vector<128x128xf32> -> vector<128x128xf32>
    %c0_3 = arith.constant 0 : index
    %c0_4 = arith.constant 0 : index
    %5 = vector.load %arg3[%c0_3, %c0_4] : memref<1x128xf32, #tpu.memory_space<vmem>>, vector<1x128xf32>
    %6 = vector.broadcast %5 : vector<1x128xf32> to vector<128x128xf32>
    %7 = arith.addf %4, %6 : vector<128x128xf32>
    %cst_5 = arith.constant 0.000000e+00 : f32
    %8 = vector.broadcast %cst_5 : f32 to vector<128x128xf32>
    %9 = arith.maximumf %7, %8 : vector<128x128xf32>
    %c0_6 = arith.constant 0 : index
    %c0_7 = arith.constant 0 : index
    %10 = vector.load %arg19[%c0_6, %c0_7] : memref<128x128xf32, #tpu.memory_space<vmem>>, vector<128x128xf32>
    tpu.vector_store %arg19[%c0_6, %c0_7], %9 {strides = array<i32>} : memref<128x128xf32, #tpu.memory_space<vmem>>, vector<128x128xf32>,
    %11 = arith.truncf %9 : vector<128x128xf32> to vector<128x128xbf16>
    %c0_8 = arith.constant 0 : index
    %c0_9 = arith.constant 0 : index
    %12 = vector.load %arg4[%c0_8, %c0_9] : memref<128x128xf32, #tpu.memory_space<vmem>>, vector<128x128xf32>
    %13 = arith.truncf %12 : vector<128x128xf32> to vector<128x128xbf16>
    %cst_10 = arith.constant dense<0.000000e+00> : vector<128x128xf32>
    %14 = tpu.matmul %11, %13, %cst_10 {dimension_numbers = #tpu.dot_dimension_numbers<[1], [0], [0], [1], [0, 0, 1, 1], [], []>} : vector<128x128xbf16>, vector<128x128xbf16>, vector<128x128xf32> -> vector<128x128xf32>
    %c0_11 = arith.constant 0 : index
    %c0_12 = arith.constant 0 : index
    %15 = vector.load %arg5[%c0_11, %c0_12] : memref<1x128xf32, #tpu.memory_space<vmem>>, vector<1x128xf32>
    %16 = vector.broadcast %15 : vector<1x128xf32> to vector<128x128xf32>
    %17 = arith.addf %14, %16 : vector<128x128xf32>
    %cst_13 = arith.constant 0.000000e+00 : f32
    %18 = vector.broadcast %cst_13 : f32 to vector<128x128xf32>
    %19 = arith.maximumf %17, %18 : vector<128x128xf32>
    %c0_14 = arith.constant 0 : index
    %c0_15 = arith.constant 0 : index
    %20 = vector.load %arg20[%c0_14, %c0_15] : memref<128x128xf32, #tpu.memory_space<vmem>>, vector<128x128xf32>
    tpu.vector_store %arg20[%c0_14, %c0_15], %19 {strides = array<i32>} : memref<128x128xf32, #tpu.memory_space<vmem>>, vector<128x128xf32>,
    %21 = arith.truncf %19 : vector<128x128xf32> to vector<128x128xbf16>
    %c0_16 = arith.constant 0 : index
    %c0_17 = arith.constant 0 : index
    %22 = vector.load %arg6[%c0_16, %c0_17] : memref<128x64xf32, #tpu.memory_space<vmem>>, vector<128x64xf32>
    %23 = arith.truncf %22 : vector<128x64xf32> to vector<128x64xbf16>
    %cst_18 = arith.constant dense<0.000000e+00> : vector<128x64xf32>
    %24 = tpu.matmul %21, %23, %cst_18 {dimension_numbers = #tpu.dot_dimension_numbers<[1], [0], [0], [1], [0, 0, 1, 1], [], []>} : vector<128x128xbf16>, vector<128x64xbf16>, vector<128x64xf32> -> vector<128x64xf32>
    %c0_19 = arith.constant 0 : index
    %c0_20 = arith.constant 0 : index
    %25 = vector.load %arg7[%c0_19, %c0_20] : memref<1x64xf32, #tpu.memory_space<vmem>>, vector<1x64xf32>
    %26 = vector.broadcast %25 : vector<1x64xf32> to vector<128x64xf32>
    %27 = arith.addf %24, %26 : vector<128x64xf32>
    %cst_21 = arith.constant 0.000000e+00 : f32
    %28 = vector.broadcast %cst_21 : f32 to vector<128x64xf32>
    %29 = arith.maximumf %27, %28 : vector<128x64xf32>
    %c0_22 = arith.constant 0 : index
    %c0_23 = arith.constant 0 : index
    %30 = vector.load %arg21[%c0_22, %c0_23] : memref<128x64xf32, #tpu.memory_space<vmem>>, vector<128x64xf32>
    tpu.vector_store %arg21[%c0_22, %c0_23], %29 {strides = array<i32>} : memref<128x64xf32, #tpu.memory_space<vmem>>, vector<128x64xf32>,
    %31 = arith.truncf %29 : vector<128x64xf32> to vector<128x64xbf16>
    %c0_24 = arith.constant 0 : index
    %c0_25 = arith.constant 0 : index
    %32 = vector.load %arg8[%c0_24, %c0_25] : memref<64x32xf32, #tpu.memory_space<vmem>>, vector<64x32xf32>
    %33 = arith.truncf %32 : vector<64x32xf32> to vector<64x32xbf16>
    %cst_26 = arith.constant dense<0.000000e+00> : vector<128x32xf32>
    %34 = tpu.matmul %31, %33, %cst_26 {dimension_numbers = #tpu.dot_dimension_numbers<[1], [0], [0], [1], [0, 0, 1, 1], [], []>} : vector<128x64xbf16>, vector<64x32xbf16>, vector<128x32xf32> -> vector<128x32xf32>
    %c0_27 = arith.constant 0 : index
    %c0_28 = arith.constant 0 : index
    %35 = vector.load %arg9[%c0_27, %c0_28] : memref<1x32xf32, #tpu.memory_space<vmem>>, vector<1x32xf32>
    %36 = vector.broadcast %35 : vector<1x32xf32> to vector<128x32xf32>
    %37 = arith.addf %34, %36 : vector<128x32xf32>
    %c0_29 = arith.constant 0 : index
    %c0_30 = arith.constant 0 : index
    %38 = vector.load %arg22[%c0_29, %c0_30] : memref<128x32xf32, #tpu.memory_space<vmem>>, vector<128x32xf32>
    tpu.vector_store %arg22[%c0_29, %c0_30], %37 {strides = array<i32>} : memref<128x32xf32, #tpu.memory_space<vmem>>, vector<128x32xf32>,
    %39 = arith.truncf %37 : vector<128x32xf32> to vector<128x32xbf16>
    %c0_31 = arith.constant 0 : index
    %c0_32 = arith.constant 0 : index
    %40 = vector.load %arg10[%c0_31, %c0_32] : memref<32x64xf32, #tpu.memory_space<vmem>>, vector<32x64xf32>
    %41 = arith.truncf %40 : vector<32x64xf32> to vector<32x64xbf16>
    %cst_33 = arith.constant dense<0.000000e+00> : vector<128x64xf32>
    %42 = tpu.matmul %39, %41, %cst_33 {dimension_numbers = #tpu.dot_dimension_numbers<[1], [0], [0], [1], [0, 0, 1, 1], [], []>} : vector<128x32xbf16>, vector<32x64xbf16>, vector<128x64xf32> -> vector<128x64xf32>
    %c0_34 = arith.constant 0 : index
    %c0_35 = arith.constant 0 : index
    %43 = vector.load %arg11[%c0_34, %c0_35] : memref<1x64xf32, #tpu.memory_space<vmem>>, vector<1x64xf32>
    %44 = vector.broadcast %43 : vector<1x64xf32> to vector<128x64xf32>
    %45 = arith.addf %42, %44 : vector<128x64xf32>
    %cst_36 = arith.constant 0.000000e+00 : f32
    %46 = vector.broadcast %cst_36 : f32 to vector<128x64xf32>
    %47 = arith.maximumf %45, %46 : vector<128x64xf32>
    %48 = arith.truncf %47 : vector<128x64xf32> to vector<128x64xbf16>
    %c0_37 = arith.constant 0 : index
    %c0_38 = arith.constant 0 : index
    %49 = vector.load %arg12[%c0_37, %c0_38] : memref<64x128xf32, #tpu.memory_space<vmem>>, vector<64x128xf32>
    %50 = arith.truncf %49 : vector<64x128xf32> to vector<64x128xbf16>
    %cst_39 = arith.constant dense<0.000000e+00> : vector<128x128xf32>
    %51 = tpu.matmul %48, %50, %cst_39 {dimension_numbers = #tpu.dot_dimension_numbers<[1], [0], [0], [1], [0, 0, 1, 1], [], []>} : vector<128x64xbf16>, vector<64x128xbf16>, vector<128x128xf32> -> vector<128x128xf32>
    %c0_40 = arith.constant 0 : index
    %c0_41 = arith.constant 0 : index
    %52 = vector.load %arg13[%c0_40, %c0_41] : memref<1x128xf32, #tpu.memory_space<vmem>>, vector<1x128xf32>
    %53 = vector.broadcast %52 : vector<1x128xf32> to vector<128x128xf32>
    %54 = arith.addf %51, %53 : vector<128x128xf32>
    %cst_42 = arith.constant 0.000000e+00 : f32
    %55 = vector.broadcast %cst_42 : f32 to vector<128x128xf32>
    %56 = arith.maximumf %54, %55 : vector<128x128xf32>
    %57 = arith.truncf %56 : vector<128x128xf32> to vector<128x128xbf16>
    %c0_43 = arith.constant 0 : index
    %c0_44 = arith.constant 0 : index
    %58 = vector.load %arg14[%c0_43, %c0_44] : memref<128x128xf32, #tpu.memory_space<vmem>>, vector<128x128xf32>
    %59 = arith.truncf %58 : vector<128x128xf32> to vector<128x128xbf16>
    %cst_45 = arith.constant dense<0.000000e+00> : vector<128x128xf32>
    %60 = tpu.matmul %57, %59, %cst_45 {dimension_numbers = #tpu.dot_dimension_numbers<[1], [0], [0], [1], [0, 0, 1, 1], [], []>} : vector<128x128xbf16>, vector<128x128xbf16>, vector<128x128xf32> -> vector<128x128xf32>
    %c0_46 = arith.constant 0 : index
    %c0_47 = arith.constant 0 : index
    %61 = vector.load %arg15[%c0_46, %c0_47] : memref<1x128xf32, #tpu.memory_space<vmem>>, vector<1x128xf32>
    %62 = vector.broadcast %61 : vector<1x128xf32> to vector<128x128xf32>
    %63 = arith.addf %60, %62 : vector<128x128xf32>
    %cst_48 = arith.constant 0.000000e+00 : f32
    %64 = vector.broadcast %cst_48 : f32 to vector<128x128xf32>
    %65 = arith.maximumf %63, %64 : vector<128x128xf32>
    %66 = arith.truncf %65 : vector<128x128xf32> to vector<128x128xbf16>
    %c0_49 = arith.constant 0 : index
    %c0_50 = arith.constant 0 : index
    %67 = vector.load %arg16[%c0_49, %c0_50] : memref<128x64xf32, #tpu.memory_space<vmem>>, vector<128x64xf32>
    %68 = arith.truncf %67 : vector<128x64xf32> to vector<128x64xbf16>
    %cst_51 = arith.constant dense<0.000000e+00> : vector<128x64xf32>
    %69 = tpu.matmul %66, %68, %cst_51 {dimension_numbers = #tpu.dot_dimension_numbers<[1], [0], [0], [1], [0, 0, 1, 1], [], []>} : vector<128x128xbf16>, vector<128x64xbf16>, vector<128x64xf32> -> vector<128x64xf32>
    %c0_52 = arith.constant 0 : index
    %c0_53 = arith.constant 0 : index
    %70 = vector.load %arg17[%c0_52, %c0_53] : memref<1x64xf32, #tpu.memory_space<vmem>>, vector<1x64xf32>
    %71 = vector.broadcast %70 : vector<1x64xf32> to vector<128x64xf32>
    %72 = arith.addf %69, %71 : vector<128x64xf32>
    %c0_54 = arith.constant 0 : index
    %c0_55 = arith.constant 0 : index
    %73 = vector.load %arg18[%c0_54, %c0_55] : memref<128x64xf32, #tpu.memory_space<vmem>>, vector<128x64xf32>
    tpu.vector_store %arg18[%c0_54, %c0_55], %72 {strides = array<i32>} : memref<128x64xf32, #tpu.memory_space<vmem>>, vector<128x64xf32>,
    return
  }
  func.func @transform_0(%arg0: i32) -> (i32, i32) {
    %c0_i32 = arith.constant 0 : i32
    %c0_i32_0 = arith.constant 0 : i32
    return %arg0, %c0_i32 : i32, i32
  }
  func.func @transform_1(%arg0: i32) -> (i32, i32) {
    %c0_i32 = arith.constant 0 : i32
    %c0_i32_0 = arith.constant 0 : i32
    %c0_i32_1 = arith.constant 0 : i32
    return %c0_i32, %c0_i32_0 : i32, i32
  }
  func.func @transform_2(%arg0: i32) -> (i32, i32) {
    %c0_i32 = arith.constant 0 : i32
    %c0_i32_0 = arith.constant 0 : i32
    %c0_i32_1 = arith.constant 0 : i32
    return %c0_i32, %c0_i32_0 : i32, i32
  }
  func.func @transform_3(%arg0: i32) -> (i32, i32) {
    %c0_i32 = arith.constant 0 : i32
    %c0_i32_0 = arith.constant 0 : i32
    %c0_i32_1 = arith.constant 0 : i32
    return %c0_i32, %c0_i32_0 : i32, i32
  }
  func.func @transform_4(%arg0: i32) -> (i32, i32) {
    %c0_i32 = arith.constant 0 : i32
    %c0_i32_0 = arith.constant 0 : i32
    %c0_i32_1 = arith.constant 0 : i32
    return %c0_i32, %c0_i32_0 : i32, i32
  }
  func.func @transform_5(%arg0: i32) -> (i32, i32) {
    %c0_i32 = arith.constant 0 : i32
    %c0_i32_0 = arith.constant 0 : i32
    %c0_i32_1 = arith.constant 0 : i32
    return %c0_i32, %c0_i32_0 : i32, i32
  }
  func.func @transform_6(%arg0: i32) -> (i32, i32) {
    %c0_i32 = arith.constant 0 : i32
    %c0_i32_0 = arith.constant 0 : i32
    %c0_i32_1 = arith.constant 0 : i32
    return %c0_i32, %c0_i32_0 : i32, i32
  }
  func.func @transform_7(%arg0: i32) -> (i32, i32) {
    %c0_i32 = arith.constant 0 : i32
    %c0_i32_0 = arith.constant 0 : i32
    %c0_i32_1 = arith.constant 0 : i32
    return %c0_i32, %c0_i32_0 : i32, i32
  }
  func.func @transform_8(%arg0: i32) -> (i32, i32) {
    %c0_i32 = arith.constant 0 : i32
    %c0_i32_0 = arith.constant 0 : i32
    %c0_i32_1 = arith.constant 0 : i32
    return %c0_i32, %c0_i32_0 : i32, i32
  }
  func.func @transform_9(%arg0: i32) -> (i32, i32) {
    %c0_i32 = arith.constant 0 : i32
    %c0_i32_0 = arith.constant 0 : i32
    %c0_i32_1 = arith.constant 0 : i32
    return %c0_i32, %c0_i32_0 : i32, i32
  }
  func.func @transform_10(%arg0: i32) -> (i32, i32) {
    %c0_i32 = arith.constant 0 : i32
    %c0_i32_0 = arith.constant 0 : i32
    %c0_i32_1 = arith.constant 0 : i32
    return %c0_i32, %c0_i32_0 : i32, i32
  }
  func.func @transform_11(%arg0: i32) -> (i32, i32) {
    %c0_i32 = arith.constant 0 : i32
    %c0_i32_0 = arith.constant 0 : i32
    %c0_i32_1 = arith.constant 0 : i32
    return %c0_i32, %c0_i32_0 : i32, i32
  }
  func.func @transform_12(%arg0: i32) -> (i32, i32) {
    %c0_i32 = arith.constant 0 : i32
    %c0_i32_0 = arith.constant 0 : i32
    %c0_i32_1 = arith.constant 0 : i32
    return %c0_i32, %c0_i32_0 : i32, i32
  }
  func.func @transform_13(%arg0: i32) -> (i32, i32) {
    %c0_i32 = arith.constant 0 : i32
    %c0_i32_0 = arith.constant 0 : i32
    %c0_i32_1 = arith.constant 0 : i32
    return %c0_i32, %c0_i32_0 : i32, i32
  }
  func.func @transform_14(%arg0: i32) -> (i32, i32) {
    %c0_i32 = arith.constant 0 : i32
    %c0_i32_0 = arith.constant 0 : i32
    %c0_i32_1 = arith.constant 0 : i32
    return %c0_i32, %c0_i32_0 : i32, i32
  }
  func.func @transform_15(%arg0: i32) -> (i32, i32) {
    %c0_i32 = arith.constant 0 : i32
    %c0_i32_0 = arith.constant 0 : i32
    %c0_i32_1 = arith.constant 0 : i32
    return %c0_i32, %c0_i32_0 : i32, i32
  }
  func.func @transform_16(%arg0: i32) -> (i32, i32) {
    %c0_i32 = arith.constant 0 : i32
    %c0_i32_0 = arith.constant 0 : i32
    %c0_i32_1 = arith.constant 0 : i32
    return %c0_i32, %c0_i32_0 : i32, i32
  }
  func.func @transform_17(%arg0: i32) -> (i32, i32) {
    %c0_i32 = arith.constant 0 : i32
    %c0_i32_0 = arith.constant 0 : i32
    return %arg0, %c0_i32 : i32, i32
  }
  func.func @transform_18(%arg0: i32) -> (i32, i32) {
    %c0_i32 = arith.constant 0 : i32
    %c0_i32_0 = arith.constant 0 : i32
    return %arg0, %c0_i32 : i32, i32
  }
  func.func @transform_19(%arg0: i32) -> (i32, i32) {
    %c0_i32 = arith.constant 0 : i32
    %c0_i32_0 = arith.constant 0 : i32
    return %arg0, %c0_i32 : i32, i32
  }
  func.func @transform_20(%arg0: i32) -> (i32, i32) {
    %c0_i32 = arith.constant 0 : i32
    %c0_i32_0 = arith.constant 0 : i32
    return %arg0, %c0_i32 : i32, i32
  }
  func.func @transform_21(%arg0: i32) -> (i32, i32) {
    %c0_i32 = arith.constant 0 : i32
    %c0_i32_0 = arith.constant 0 : i32
    return %arg0, %c0_i32 : i32, i32
  }
}

</mosaic_0001>

<bundles_post_ra>
// kernel: tpu_custom_call.1
= control target key start
LH: loop header
LB: loop body
LE: loop exit
PB: predicated region body
PF: predicated region fallthrough
CT: control target
= control target key end

     0   :  { %s3632_s0 = inlined_call_operand.vmem [shape: f32[256,64], index: 0, kind: input, shape index: {}]   ;;  %s3633_s1 = inlined_call_operand.vmem [shape: f32[64,128], index: 1, kind: input, shape index: {}]   ;;  %s3634_s2 = inlined_call_operand.vmem [shape: f32[1,128], index: 2, kind: input, shape index: {}]   ;;  %s3635_s3 = inlined_call_operand.vmem [shape: f32[128,128], index: 3, kind: input, shape index: {}]   ;;  %s3636_s4 = inlined_call_operand.vmem [shape: f32[1,128], index: 4, kind: input, shape index: {}]   ;;  %s3637_s5 = inlined_call_operand.vmem [shape: f32[128,64], index: 5, kind: input, shape index: {}]   ;;  %s3638_s6 = inlined_call_operand.vmem [shape: f32[1,64], index: 6, kind: input, shape index: {}]   ;;  %s3639_s7 = inlined_call_operand.vmem [shape: f32[64,32], index: 7, kind: input, shape index: {}]   ;;  %s3640_s8 = inlined_call_operand.vmem [shape: f32[1,32], index: 8, kind: input, shape index: {}]   ;;  %s3641_s9 = inlined_call_operand.vmem [shape: f32[32,64], index: 9, kind: input, shape index: {}]   ;;  %s3642_s10 = inlined_call_operand.vmem [shape: f32[1,64], index: 10, kind: input, shape index: {}]   ;;  %s3643_s11 = inlined_call_operand.vmem [shape: f32[64,128], index: 11, kind: input, shape index: {}]   ;;  %s3644_s12 = inlined_call_operand.vmem [shape: f32[1,128], index: 12, kind: input, shape index: {}]   ;;  %s3645_s13 = inlined_call_operand.vmem [shape: f32[128,128], index: 13, kind: input, shape index: {}]   ;;  %s3646_s14 = inlined_call_operand.vmem [shape: f32[1,128], index: 14, kind: input, shape index: {}]   ;;  %s3647_s15 = inlined_call_operand.vmem [shape: f32[128,64], index: 15, kind: input, shape index: {}]   ;;  %s3648_s16 = inlined_call_operand.vmem [shape: f32[1,64], index: 16, kind: input, shape index: {}]   ;;  %s3649_s17 = inlined_call_operand.vmem [shape: f32[256,64], index: 17, kind: output, shape index: {0}]   ;;  %s3650_s18 = inlined_call_operand.hbm [shape: f32[256,128], index: 18, kind: output, shape index: {1}]   ;;  %s3651_s19 = inlined_call_operand.hbm [shape: f32[256,128], index: 19, kind: output, shape index: {2}]   ;;  %s3652_s20 = inlined_call_operand.vmem [shape: f32[256,64], index: 20, kind: output, shape index: {3}]   ;;  %s3653_s21 = inlined_call_operand.vmem [shape: f32[256,32], index: 21, kind: output, shape index: {4}]  }
   0x1   :  { %3668 = sst [smem:[#allocation14_spill]] %s3632_s0 }
   0x2   :  { %3669 = sst [smem:[#allocation15_spill]] %s3633_s1 }
   0x3   :  { %3670 = sst [smem:[#allocation16_spill]] %s3634_s2 }
   0x4   :  { %3671 = sst [smem:[#allocation17_spill]] %s3635_s3 }
   0x5   :  { %3672 = sst [smem:[#allocation18_spill]] %s3636_s4 }
   0x6   :  { %3673 = sst [smem:[#allocation19_spill]] %s3637_s5 }
   0x7   :  { %3674 = sst [smem:[#allocation20_spill]] %s3638_s6 }
   0x8   :  { %3675 = sst [smem:[#allocation21_spill]] %s3639_s7 }
   0x9   :  { %3676 = sst [smem:[#allocation22_spill]] %s3640_s8 }
   0xa   :  { %3677 = sst [smem:[#allocation23_spill]] %s3648_s16 }
   0xb   :  { %3678 = sst [smem:[#allocation24_spill]] %s3649_s17 }
   0xc   :  { %3679 = sst [smem:[#allocation25_spill]] %s3651_s19 }
   0xd   :  { %27 = vsyncpa [#allocation3], 0 }
   0xe   :  { %29 = vsyncpa [#allocation3 + $0x1], 0 }
   0xf   :  { %30 = vsyncpa [#allocation5], 0 }
  0x10   :  { %32 = vsyncpa [#allocation5 + $0x1], 0  ;;  %s2923_s2 = smov 0   ;;  %s2925_s25 = smov 0  }
  0x11   :  { %s2927_s26 = smov 0   ;;  %s2929_s27 = smov 0  }
  0x12 LB: > { %3680 = sst [smem:[#allocation8_spill]] %s2795_s2  ;;  %s2944_s3 = sadd.s32 4294967295, %s2807_s27   ;;  %s2807_s27 = sphi %s2929_s27, %s3706_s27   ;;  %s2803_s26 = sphi %s2927_s26, %s3708_s26   ;;  %s2799_s25 = sphi %s2925_s25, %s3710_s25   ;;  %s2795_s2 = sphi %s2923_s2, %s3709_s2  }
  0x13   : > { %3681 = sst [smem:[#allocation9_spill]] %s2803_s26  ;;  %s2265_s28 = sadd.s32 4294967294, %s2807_s27  }
  0x14   : > { %3682 = sst [smem:[#allocation10_spill]] %s2807_s27  ;;  %s2948_s29 = sadd.s32 1, %s2807_s27  }
  0x15   : > { %3683 = sst [smem:[#allocation11_spill]] %s2948_s29  ;;  %s433_s0 = sadd.s32 1, %s2803_s26 }
  0x16   : > { %s430_s4 = ssub.s32 %s2807_s27, %s2948_s29  ;;  %p443_p0 = scmp.ne.s32.totalorder %s2803_s26, %s2799_s25 }
  0x17   : > { %p431_p1 = scmp.eq.s32.totalorder %s430_s4, 0  ;;  %p444_p2 = scmp.eq.s32.totalorder %s2944_s3, 1 }
  0x18   : > { %p449_p3 = scmp.ne.s32.totalorder %s2799_s25, %s2795_s2  ;;  %p450_p4 = scmp.eq.s32.totalorder %s2265_s28, 1 }
  0x19   : > { %s2959_s30 = scalar_select %p431_p1, %s2803_s26, %s433_s0  }
  0x1a   : > { %p2961_p5 = por %p444_p2, %p443_p0  ;;  %p2965_p6 = por %p450_p4, %p449_p3 }
  0x1b   : > { %3684 = sst [smem:[#allocation12_spill]] %s2959_s30  ;;  %p2268_p7 = scmp.ge.s32.totalorder %s2807_s27, 1 }
  0x1c   : > { %s3686_s22 = scalar_select %p2965_p6, 1, 0 }
  0x1d   : > { %p603_p8 = scmp.lt.s32.totalorder %s2807_s27, 3 }
  0x1e   : > { %3687 = sst [smem:[#allocation13_spill]] %s3686_s22 }
  0x1f   : > { %p604_p9 = pnand %p2268_p7, %p603_p8 }
  0x20   : > { %s3688_s24 = sld [smem:[#allocation15_spill]] (!%p604_p9)  ;;  %s2271_s26 = sshll.u32 (!%p604_p9), %s2944_s3, 4  ;;  %vm753_vm0 = vcmask (!%p604_p9), 523264   ;;  %vm1391_vm1 = vcmask (!%p604_p9), 261120  }
  0x21   : > { %607 = sbr.rel (%p604_p9) target bundleno = 1851 (0x73b), region = 88  ;;  %p684_p10 = scmp.lt.s32.totalorder (!%p604_p9), %s2271_s26, 31 }
  0x22   : > { %s3689_s30 = sld [smem:[#allocation17_spill]] (!%p604_p9)  ;;  %s3690_s16 = sld [smem:[#allocation14_spill]] (!%p604_p9) }
  0x23   : > { %s3693_s0 = sld [smem:[#allocation16_spill]] (!%p604_p9)  ;;  %s3694_s7 = sld [smem:[#allocation21_spill]] (!%p604_p9) }
  0x24   : > { %s3695_s2 = sld [smem:[#allocation18_spill]] (!%p604_p9)  ;;  %s3697_s6 = sld [smem:[#allocation20_spill]] (!%p604_p9) }
  0x25   : > { %s3698_s8 = sld [smem:[#allocation22_spill]] (!%p604_p9)  ;;  %s3667_s28 = sshll.u32 (!%p604_p9), %s2944_s3, 11 }
  0x26   : > { %v734_v0 = vld [vmem:[%s3688_s24] sm:$0xff] (!%p604_p9)  ;;  %v735_v1 = vld [vmem:[%s3688_s24 + $0x8] sm:$0xff] (!%p604_p9)  ;;  %v736_v2 = vld [vmem:[%s3688_s24 + $0x10] sm:$0xff] (!%p604_p9)  ;;  %s3506_s22 = scalar_lea.hbm (!%p604_p9), %s3650_s18, %s3667_s28 }
  0x27   : > { %v742_v3 = vpack.c.bf16 (!%p604_p9), %v735_v1, %v734_v0  ;;  %v737_v4 = vld [vmem:[%s3688_s24 + $0x18] sm:$0xff] (!%p604_p9)  ;;  %v738_v6 = vld [vmem:[%s3688_s24 + $0x20] sm:$0xff] (!%p604_p9)  ;;  %v739_v7 = vld [vmem:[%s3688_s24 + $0x28] sm:$0xff] (!%p604_p9) }
  0x28   : > { %v743_v5 = vpack.c.bf16 %v737_v4, %v736_v2  ;;  %v915_v8 = vld [vmem:[%s3689_s30] sm:$0xff]  ;;  %s3712_s26 = smov (!%p684_p10, %s2271_s26), 31  ;;  %v916_v9 = vld [vmem:[%s3689_s30 + $0x8] sm:$0xff]  ;;  %v917_v10 = vld [vmem:[%s3689_s30 + $0x10] sm:$0xff]  ;;  %v744_v14 = vpack.c.bf16 %v739_v7, %v738_v6 }
  0x29   : > { %2439 = vmatprep.subr.bf16.mxu0 %v742_v3  ;;  %v918_v11 = vld [vmem:[%s3689_s30 + $0x18] sm:$0xff]  ;;  %v931_v12 = vpack.c.bf16 %v916_v9, %v915_v8  ;;  %s3002_s27 = sshll.u32 %s3712_s26, 3  ;;  %v919_v15 = vld [vmem:[%s3689_s30 + $0x20] sm:$0xff]  ;;  %v920_v16 = vld [vmem:[%s3689_s30 + $0x28] sm:$0xff]  ;;  %s3691_s26 = sld [smem:[#allocation19_spill]] }
  0x2a   : > { %2440 = vmatpush3.bf16.msra.mxu0 %v742_v3  ;;  %v932_v13 = vpack.c.bf16 %v918_v11, %v917_v10  ;;  %v740_v17 = vld [vmem:[%s3688_s24 + $0x30] sm:$0xff]  ;;  %v741_v18 = vld [vmem:[%s3688_s24 + $0x38] sm:$0xff]  ;;  %s3020_s19 = scalar_lea.vmem %s3690_s16, %s3002_s27  ;;  %v933_v22 = vpack.c.bf16 %v920_v16, %v919_v15  ;;  %v923_v29 = vld [vmem:[%s3689_s30 + $0x40] sm:$0xff]  ;;  %s3113_s16 = sand.u32 1, %s2799_s25  }
  0x2b   : > { %2441 = vmatprep.subr.bf16.mxu0 %v743_v5  ;;  %2463 = vmatprep.subr.bf16.mxu1 %v931_v12  ;;  %v710_v19 = vld [vmem:[%s3020_s19] sm:$0xff]  ;;  %v711_v20 = vld [vmem:[%s3020_s19 + $0x8] sm:$0xff]  ;;  %v745_v23 = vpack.c.bf16 %v741_v18, %v740_v17  ;;  %v921_v24 = vld [vmem:[%s3689_s30 + $0x30] sm:$0xff]  ;;  %s3664_s4 = sshll.u32 %s3113_s16, 7  ;;  %s3696_s23 = sshll.u32 %s3113_s16, 7 }
  0x2c   : > { %2464 = vmatpush3.bf16.msra.mxu1 %v931_v12  ;;  %v726_v21 = vpack.c.bf16 %v711_v20, %v710_v19  ;;  %v922_v25 = vld [vmem:[%s3689_s30 + $0x38] sm:$0xff]  ;;  %v712_v26 = vld [vmem:[%s3020_s19 + $0x10] sm:$0xff]  ;;  %v714_v30 = vld [vmem:[%s3020_s19 + $0x20] sm:$0xff]  ;;  %s3127_s29 = scalar_lea.vmem [#allocation2], %s3664_s4  ;;  %s2809_s4 = smov [#allocation2]  }
  0x2d   : > { %2465 = vmatprep.subr.bf16.mxu1 %v932_v13  ;;  %v713_v27 = vld [vmem:[%s3020_s19 + $0x18] sm:$0xff]  ;;  %v934_v28 = vpack.c.bf16 %v922_v25, %v921_v24  ;;  %v715_v31 = vld [vmem:[%s3020_s19 + $0x28] sm:$0xff]  ;;  %v925_v36 = vld [vmem:[%s3689_s30 + $0x50] sm:$0xff] }
  0x2e   : > { %2442 = vmatpush3.bf16.msra.mxu0 %v743_v5  ;;  %2447 = vmatprep.mubr.msk.bf16.mxu0 %vm753_vm0, %v726_v21  ;;  %v924_v32 = vld [vmem:[%s3689_s30 + $0x48] sm:$0xff]  ;;  %v727_v33 = vpack.c.bf16 %v713_v27, %v712_v26  ;;  %v728_v34 = vpack.c.bf16 %v715_v31, %v714_v30  ;;  %v926_v37 = vld [vmem:[%s3689_s30 + $0x58] sm:$0xff]  ;;  %v716_v38 = vld [vmem:[%s3020_s19 + $0x30] sm:$0xff] }
  0x2f   : > { %2443 = vmatprep.subr.bf16.mxu0 %v744_v14  ;;  %v935_v35 = vpack.c.bf16 %v924_v32, %v923_v29  ;;  %v717_v39 = vld [vmem:[%s3020_s19 + $0x38] sm:$0xff]  ;;  %v936_v40 = vpack.c.bf16 %v926_v37, %v925_v36  ;;  %v718_v41 = vld [vmem:[%s3020_s19 + $0x40] sm:$0xff]  ;;  %v719_v42 = vld [vmem:[%s3020_s19 + $0x48] sm:$0xff]  ;;  %s3692_s1 = smov %s3691_s26 }
  0x30   : > { %2466 = vmatpush3.bf16.msra.mxu1 %v932_v13  ;;  %v729_v43 = vpack.c.bf16 %v717_v39, %v716_v38  ;;  %v730_v44 = vpack.c.bf16 %v719_v42, %v718_v41  ;;  %v720_v45 = vld [vmem:[%s3020_s19 + $0x50] sm:$0xff]  ;;  %v721_v46 = vld [vmem:[%s3020_s19 + $0x58] sm:$0xff]  ;;  %v722_v47 = vld [vmem:[%s3020_s19 + $0x60] sm:$0xff] }
  0x31   : > { %2467 = vmatprep.subr.bf16.mxu1 %v933_v22  ;;  %v723_v48 = vld [vmem:[%s3020_s19 + $0x68] sm:$0xff]  ;;  %v731_v49 = vpack.c.bf16 %v721_v46, %v720_v45  ;;  %v724_v51 = vld [vmem:[%s3020_s19 + $0x70] sm:$0xff]  ;;  %v725_v52 = vld [vmem:[%s3020_s19 + $0x78] sm:$0xff]  ;;  %s3338_s19 = scalar_lea.vmem %s3653_s21, %s3002_s27 }
  0x32   : > { %2444 = vmatpush3.bf16.msra.mxu0 %v744_v14  ;;  %v732_v50 = vpack.c.bf16 %v723_v48, %v722_v47  ;;  %v733_v53 = vpack.c.bf16 %v725_v52, %v724_v51  ;;  %v927_v54 = vld [vmem:[%s3689_s30 + $0x60] sm:$0xff]  ;;  %v928_v55 = vld [vmem:[%s3689_s30 + $0x68] sm:$0xff]  ;;  %v929_v57 = vld [vmem:[%s3689_s30 + $0x70] sm:$0xff] }
  0x33   : > { %2445 = vmatprep.subr.bf16.mxu0 %v745_v23  ;;  %v937_v56 = vpack.c.bf16 %v928_v55, %v927_v54  ;;  %v930_v58 = vld [vmem:[%s3689_s30 + $0x78] sm:$0xff]  ;;  %v1083_v60 = vld [vmem:[%s3691_s26] sm:$0xff]  ;;  %v1084_v61 = vld [vmem:[%s3692_s1 + $0x8] sm:$0xff]  ;;  %s3198_s26 = scalar_lea.vmem [#allocation4], %s3696_s23  ;;  %s3244_s23 = scalar_lea.vmem %s3652_s20, %s3002_s27 }
  0x34   : > { %2468 = vmatpush3.bf16.msra.mxu1 %v933_v22  ;;  %v938_v59 = vpack.c.bf16 %v930_v58, %v929_v57  ;;  %v1085_v62 = vld [vmem:[%s3692_s1 + $0x10] sm:$0xff]  ;;  %v1099_v63 = vpack.c.bf16 %v1084_v61, %v1083_v60  ;;  %v1086_v0 = vld [vmem:[%s3692_s1 + $0x18] sm:$0xff]  ;;  %v1087_v2 = vld [vmem:[%s3692_s1 + $0x20] sm:$0xff] }
  0x35   : > { %2469 = vmatprep.subr.bf16.mxu1 %v934_v28  ;;  %v1100_v1 = vpack.c.bf16 %v1086_v0, %v1085_v62  ;;  %v1088_v3 = vld [vmem:[%s3692_s1 + $0x28] sm:$0xff]  ;;  %v1089_v5 = vld [vmem:[%s3692_s1 + $0x30] sm:$0xff]  ;;  %v1090_v6 = vld [vmem:[%s3692_s1 + $0x38] sm:$0xff] }
  0x36   : > { %2446 = vmatpush3.bf16.msra.mxu0 %v745_v23  ;;  %v1101_v4 = vpack.c.bf16 %v1088_v3, %v1087_v2  ;;  %v1102_v7 = vpack.c.bf16 %v1090_v6, %v1089_v5  ;;  %v1091_v8 = vld [vmem:[%s3692_s1 + $0x40] sm:$0xff]  ;;  %v1092_v9 = vld [vmem:[%s3692_s1 + $0x48] sm:$0xff]  ;;  %v1093_v11 = vld [vmem:[%s3692_s1 + $0x50] sm:$0xff] }
  0x37   : > { %2495 = vmatprep.subr.bf16.mxu0 %v1099_v63  ;;  %v1103_v10 = vpack.c.bf16 %v1092_v9, %v1091_v8  ;;  %v1094_v12 = vld [vmem:[%s3692_s1 + $0x58] sm:$0xff]  ;;  %v3118_v14 = vld [vmem:[%s3693_s0] ss:$0 sm:$0xff]  ;;  %v1096_v8 = vld [vmem:[%s3692_s1 + $0x68] sm:$0xff] }
  0x38   : > { %2470 = vmatpush3.bf16.msra.mxu1 %v934_v28  ;;  %v1104_v13 = vpack.c.bf16 %v1094_v12, %v1093_v11  ;;  %v1098_v11 = vld [vmem:[%s3692_s1 + $0x78] sm:$0xff] }
  0x39   : > { %2448 = vmatmul.mubr.msk.bf16.vlgmr.msra.gmra.mrb[0].mxu0 %vm753_vm0, %v727_v33  ;;  %2471 = vmatprep.subr.bf16.mxu1 %v935_v35 }
  0x3a   : > { %2451 = vmatprep.mubr.msk.bf16.mxu0 %vm753_vm0, %v728_v34  ;;  %2496 = vmatpush3.bf16.msra.mxu0 %v1099_v63 }
  0x3b   : > { %2497 = vmatprep.subr.bf16.mxu0 %v1100_v1 }
  0x3c   : > { %2472 = vmatpush3.bf16.msra.mxu1 %v935_v35 }
  0x3d   : > { %2473 = vmatprep.subr.bf16.mxu1 %v936_v40 }
  0x3e   : > { %2498 = vmatpush3.bf16.msra.mxu0 %v1100_v1 }
  0x3f   : > { %2499 = vmatprep.subr.bf16.mxu0 %v1101_v4 }
  0x40   : > { %2474 = vmatpush3.bf16.msra.mxu1 %v936_v40 }
  0x41   : > { %2452 = vmatmul.mubr.msk.bf16.gmra.mrb[4].mxu0 %vm753_vm0, %v729_v43  ;;  %2475 = vmatprep.subr.bf16.mxu1 %v937_v56 }
  0x42   : > { %2455 = vmatprep.mubr.msk.bf16.mxu0 %vm753_vm0, %v730_v44  ;;  %2500 = vmatpush3.bf16.msra.mxu0 %v1101_v4 }
  0x43   : > { %2501 = vmatprep.subr.bf16.mxu0 %v1102_v7 }
  0x44   : > { %2476 = vmatpush3.bf16.msra.mxu1 %v937_v56 }
  0x45   : > { %2477 = vmatprep.subr.bf16.mxu1 %v938_v59 }
  0x46   : > { %2502 = vmatpush3.bf16.msra.mxu0 %v1102_v7  ;;  %v1095_v7 = vld [vmem:[%s3692_s1 + $0x60] sm:$0xff] }
  0x47   : > { %2503 = vmatprep.subr.bf16.mxu0 %v1103_v10  ;;  %v1105_v9 = vpack.c.bf16 %v1096_v8, %v1095_v7 }
  0x48   : > { %2478 = vmatpush3.bf16.msra.mxu1 %v938_v59 }
  0x49   : > { %2456 = vmatmul.mubr.msk.bf16.gmra.mrb[8].mxu0 %vm753_vm0, %v731_v49 }
  0x4a   : > { %2459 = vmatprep.mubr.msk.bf16.mxu0 %vm753_vm0, %v732_v50  ;;  %2504 = vmatpush3.bf16.msra.mxu0 %v1103_v10  ;;  %v1097_v10 = vld [vmem:[%s3692_s1 + $0x70] sm:$0xff]  ;;  %s2072_s1 = sshll.u32 %s3127_s29, 4  ;;  %s3508_s1 = int_to_ptr.vmem [resolvable:$true] %s2072_s1 }
  0x4b   : > { %2505 = vmatprep.subr.bf16.mxu0 %v1104_v13  ;;  %v1106_v12 = vpack.c.bf16 %v1098_v11, %v1097_v10  ;;  %s2713_s24 = scalar_lea.vmem %s3508_s1, 2048 }
  0x4c   : > { %p2714_p11 = scmp.ne.s32.totalorder %s3508_s1, %s2713_s24 }
  0x4e   : > { %2506 = vmatpush3.bf16.msra.mxu0 %v1104_v13  ;;  %v1251_v13 = vld [vmem:[%s3694_s7] sm:$0xff]  ;;  %p2715_p12 = pnand %p2714_p11, %p2961_p5 }
  0x4f   : > { %2507 = vmatprep.subr.bf16.mxu0 %v1105_v9 }
  0x50   : > { %p2716_p13 = pneg %p2715_p12 }
  0x51   : > { %2460 = vmatmul.mubr.msk.bf16.gmra.mrb[12].mxu0 %vm753_vm0, %v733_v53 }
  0x52   : > { %2508 = vmatpush3.bf16.msra.mxu0 %v1105_v9 }
  0x53   : > { %2509 = vmatprep.subr.bf16.mxu0 %v1106_v12 }
  0x56   : > { %2510 = vmatpush3.bf16.msra.mxu0 %v1106_v12 }
 0x10c   : > { %v2449_v15 = vpop.f32.mrb[0].mxu0 }
 0x10d   : > { %v821_v16 = vadd.f32 %v2449_v15, %v3118_v14  ;;  %v812_v17 = vpop.f32.mrb[1].mxu0  ;;  %v1253_v15 = vld [vmem:[%s3694_s7 + $0x10] sm:$0xff] }
 0x10e   : > { %v813_v18 = vadd.f32 %v3118_v14, %v812_v17  ;;  %v2450_v19 = vpop.f32.mrb[2].mxu0  ;;  %v1254_v17 = vld [vmem:[%s3694_s7 + $0x18] sm:$0xff] }
 0x10f   : > { %v877_v20 = vmax.f32 %v821_v16, 0.0  ;;  %v824_v21 = vadd.f32 %v2450_v19, %v3118_v14  ;;  %v815_v22 = vpop.f32.mrb[3].mxu0  ;;  %v1255_v19 = vld [vmem:[%s3694_s7 + $0x20] sm:$0xff] }
 0x110   : > { %v875_v23 = vmax.f32 %v813_v18, 0.0  ;;  %v816_v24 = vadd.f32 %v3118_v14, %v815_v22  ;;  %v1260_v18 = vpack.c.bf16 %v1254_v17, %v1253_v15  ;;  %v3190_v22 = vld [vmem:[%s3695_s2] ss:$0 sm:$0xff]  ;;  %v1257_v15 = vld [vmem:[%s3694_s7 + $0x30] sm:$0xff]  ;;  %s2717_s2 = sshll.u32 %s2809_s4, 4  ;;  %s2718_s2 = int_to_ptr.vmem [resolvable:$false] %s2717_s2 }
 0x111   : > { %893 = vst [vmem:[%s3127_s29 + $0x10] sm:$0xff] %v877_v20  ;;  %v878_v25 = vmax.f32 %v824_v21, 0.0  ;;  %p2720_p0 = scmp.lt.s32.totalorder %s3508_s1, %s2718_s2 }
 0x112   : > { %891 = vst [vmem:[%s3127_s29] sm:$0xff] %v875_v23  ;;  %v876_v26 = vmax.f32 %v816_v24, 0.0 }
 0x113   : > { %894 = vst [vmem:[%s3127_s29 + $0x18] sm:$0xff] %v878_v25  ;;  %v908_v27 = vpack.c.bf16 %v878_v25, %v877_v20  ;;  %v1256_v20 = vld [vmem:[%s3694_s7 + $0x28] sm:$0xff] }
 0x114   : > { %892 = vst [vmem:[%s3127_s29 + $0x8] sm:$0xff] %v876_v26  ;;  %v2453_v28 = vpop.f32.mrb[4].mxu0  ;;  %v907_v29 = vpack.c.bf16 %v876_v26, %v875_v23  ;;  %v1261_v21 = vpack.c.bf16 %v1256_v20, %v1255_v19 }
 0x115   : > { %v837_v30 = vadd.f32 %v2453_v28, %v3118_v14  ;;  %v828_v31 = vpop.f32.mrb[5].mxu0 }
 0x116   : > { %v829_v32 = vadd.f32 %v3118_v14, %v828_v31  ;;  %v2454_v33 = vpop.f32.mrb[6].mxu0  ;;  %2479 = vmatprep.mubr.bf16.mxu1 %v907_v29 }
 0x117   : > { %v881_v34 = vmax.f32 %v837_v30, 0.0  ;;  %v840_v35 = vadd.f32 %v2454_v33, %v3118_v14  ;;  %v831_v36 = vpop.f32.mrb[7].mxu0  ;;  %2480 = vmatmul.mubr.bf16.vlgmr.msra.gmra.mrb[0].mxu1 %v908_v27 }
 0x118   : > { %v879_v37 = vmax.f32 %v829_v32, 0.0  ;;  %v832_v38 = vadd.f32 %v3118_v14, %v831_v36 }
 0x119   : > { %897 = vst [vmem:[%s3127_s29 + $0x30] sm:$0xff] %v881_v34  ;;  %v882_v39 = vmax.f32 %v840_v35, 0.0 }
 0x11a   : > { %895 = vst [vmem:[%s3127_s29 + $0x20] sm:$0xff] %v879_v37  ;;  %v880_v40 = vmax.f32 %v832_v38, 0.0 }
 0x11b   : > { %898 = vst [vmem:[%s3127_s29 + $0x38] sm:$0xff] %v882_v39  ;;  %v910_v41 = vpack.c.bf16 %v882_v39, %v881_v34 }
 0x11c   : > { %896 = vst [vmem:[%s3127_s29 + $0x28] sm:$0xff] %v880_v40  ;;  %v909_v42 = vpack.c.bf16 %v880_v40, %v879_v37  ;;  %v2457_v43 = vpop.f32.mrb[8].mxu0 }
 0x11d   : > { %v853_v44 = vadd.f32 %v2457_v43, %v3118_v14  ;;  %v844_v45 = vpop.f32.mrb[9].mxu0 }
 0x11e   : > { %v845_v46 = vadd.f32 %v3118_v14, %v844_v45  ;;  %v2458_v47 = vpop.f32.mrb[10].mxu0  ;;  %2483 = vmatprep.mubr.bf16.mxu1 %v909_v42 }
 0x11f   : > { %v885_v48 = vmax.f32 %v853_v44, 0.0  ;;  %v856_v49 = vadd.f32 %v2458_v47, %v3118_v14  ;;  %v847_v50 = vpop.f32.mrb[11].mxu0  ;;  %2484 = vmatmul.mubr.bf16.gmra.mrb[4].mxu1 %v910_v41 }
 0x120   : > { %v883_v51 = vmax.f32 %v845_v46, 0.0  ;;  %v848_v52 = vadd.f32 %v3118_v14, %v847_v50 }
 0x121   : > { %901 = vst [vmem:[%s3127_s29 + $0x50] sm:$0xff] %v885_v48  ;;  %v886_v53 = vmax.f32 %v856_v49, 0.0 }
 0x122   : > { %899 = vst [vmem:[%s3127_s29 + $0x40] sm:$0xff] %v883_v51  ;;  %v884_v54 = vmax.f32 %v848_v52, 0.0 }
 0x123   : > { %902 = vst [vmem:[%s3127_s29 + $0x58] sm:$0xff] %v886_v53  ;;  %v912_v55 = vpack.c.bf16 %v886_v53, %v885_v48 }
 0x124   : > { %900 = vst [vmem:[%s3127_s29 + $0x48] sm:$0xff] %v884_v54  ;;  %v911_v56 = vpack.c.bf16 %v884_v54, %v883_v51  ;;  %v2461_v57 = vpop.f32.mrb[12].mxu0 }
 0x125   : > { %v869_v58 = vadd.f32 %v2461_v57, %v3118_v14  ;;  %v860_v59 = vpop.f32.mrb[13].mxu0 }
 0x126   : > { %v861_v60 = vadd.f32 %v3118_v14, %v860_v59  ;;  %v2462_v61 = vpop.f32.mrb[14].mxu0  ;;  %2487 = vmatprep.mubr.bf16.mxu1 %v911_v56 }
 0x127   : > { %v889_v62 = vmax.f32 %v869_v58, 0.0  ;;  %v872_v63 = vadd.f32 %v2462_v61, %v3118_v14  ;;  %v863_v0 = vpop.f32.mrb[15].mxu0  ;;  %2488 = vmatmul.mubr.bf16.gmra.mrb[8].mxu1 %v912_v55 }
 0x128   : > { %v887_v1 = vmax.f32 %v861_v60, 0.0  ;;  %v864_v2 = vadd.f32 %v3118_v14, %v863_v0  ;;  %v1252_v14 = vld [vmem:[%s3694_s7 + $0x8] sm:$0xff] }
 0x129   : > { %905 = vst [vmem:[%s3127_s29 + $0x70] sm:$0xff] %v889_v62  ;;  %v890_v3 = vmax.f32 %v872_v63, 0.0  ;;  %v1259_v16 = vpack.c.bf16 %v1252_v14, %v1251_v13 }
 0x12a   : > { %903 = vst [vmem:[%s3127_s29 + $0x60] sm:$0xff] %v887_v1  ;;  %v888_v4 = vmax.f32 %v864_v2, 0.0 }
 0x12b   : > { %906 = vst [vmem:[%s3127_s29 + $0x78] sm:$0xff] %v890_v3  ;;  %v914_v5 = vpack.c.bf16 %v890_v3, %v889_v62  ;;  %2527 = vmatprep.subr.bf16.mxu0 %v1259_v16  ;;  %2659 = vmatprep.subr.bf16.mxu1 %v1259_v16 }
 0x12c   : > { %904 = vst [vmem:[%s3127_s29 + $0x68] sm:$0xff] %v888_v4  ;;  %v913_v6 = vpack.c.bf16 %v888_v4, %v887_v1  ;;  %2663 = vmatpush3.bf16.msra.mxu1 %v1259_v16  ;;  %s2719_s29 = scalar_lea.vmem %s2718_s2, 4096 }
 0x12d   : > { %2660 = vmatprep.subr.bf16.mxu1 %v1260_v18  ;;  %p2721_p1 = scmp.lt.s32.totalorder %s2719_s29, %s2713_s24 }
 0x12e   : > { %2491 = vmatprep.mubr.bf16.mxu1 %v913_v6 }
 0x12f   : > { %2492 = vmatmul.mubr.bf16.gmra.mrb[12].mxu1 %v914_v5  ;;  %p2722_p2 = por %p2721_p1, %p2720_p0 }
 0x130   : > { %2664 = vmatpush3.bf16.msra.mxu1 %v1260_v18 }
 0x131   : > { %2661 = vmatprep.subr.bf16.mxu1 %v1261_v21  ;;  %p2723_p3 = pnand %p2722_p2, %p2716_p13 }
 0x134   : > { %2665 = vmatpush3.bf16.msra.mxu1 %v1261_v21 }
 0x1ea   : > { %v2481_v23 = vpop.f32.mrb[0].mxu1 }
 0x1eb   : > { %v989_v24 = vadd.f32 %v2481_v23, %v3190_v22  ;;  %v980_v25 = vpop.f32.mrb[1].mxu1 }
 0x1ec   : > { %v981_v26 = vadd.f32 %v3190_v22, %v980_v25  ;;  %v2482_v27 = vpop.f32.mrb[2].mxu1 }
 0x1ed   : > { %v1045_v28 = vmax.f32 %v989_v24, 0.0  ;;  %v992_v29 = vadd.f32 %v2482_v27, %v3190_v22  ;;  %v983_v30 = vpop.f32.mrb[3].mxu1 }
 0x1ee   : > { %v1043_v31 = vmax.f32 %v981_v26, 0.0  ;;  %v984_v32 = vadd.f32 %v3190_v22, %v983_v30 }
 0x1ef   : > { %1061 = vst [vmem:[%s3198_s26 + $0x10] sm:$0xff] %v1045_v28  ;;  %v1046_v33 = vmax.f32 %v992_v29, 0.0 }
 0x1f0   : > { %1059 = vst [vmem:[%s3198_s26] sm:$0xff] %v1043_v31  ;;  %v1044_v34 = vmax.f32 %v984_v32, 0.0 }
 0x1f1   : > { %1062 = vst [vmem:[%s3198_s26 + $0x18] sm:$0xff] %v1046_v33  ;;  %v1076_v35 = vpack.c.bf16 %v1046_v33, %v1045_v28 }
 0x1f2   : > { %1060 = vst [vmem:[%s3198_s26 + $0x8] sm:$0xff] %v1044_v34  ;;  %v1075_v36 = vpack.c.bf16 %v1044_v34, %v1043_v31  ;;  %v2485_v37 = vpop.f32.mrb[4].mxu1 }
 0x1f3   : > { %v1005_v38 = vadd.f32 %v2485_v37, %v3190_v22  ;;  %v996_v39 = vpop.f32.mrb[5].mxu1 }
 0x1f4   : > { %v997_v40 = vadd.f32 %v3190_v22, %v996_v39  ;;  %v2486_v41 = vpop.f32.mrb[6].mxu1  ;;  %2511 = vmatprep.mubr.bf16.mxu0 %v1075_v36 }
 0x1f5   : > { %v1049_v42 = vmax.f32 %v1005_v38, 0.0  ;;  %v1008_v43 = vadd.f32 %v2486_v41, %v3190_v22  ;;  %v999_v44 = vpop.f32.mrb[7].mxu1  ;;  %2512 = vmatmul.mubr.bf16.vlgmr.msra.gmra.mrb[16].mxu0 %v1076_v35 }
 0x1f6   : > { %v1047_v45 = vmax.f32 %v997_v40, 0.0  ;;  %v1000_v46 = vadd.f32 %v3190_v22, %v999_v44  ;;  %2528 = vmatpush3.bf16.msra.mxu0 %v1259_v16  ;;  %v1258_v16 = vld [vmem:[%s3694_s7 + $0x38] sm:$0xff] }
 0x1f7   : > { %1065 = vst [vmem:[%s3198_s26 + $0x30] sm:$0xff] %v1049_v42  ;;  %v1050_v47 = vmax.f32 %v1008_v43, 0.0  ;;  %2529 = vmatprep.subr.bf16.mxu0 %v1260_v18  ;;  %v1262_v17 = vpack.c.bf16 %v1258_v16, %v1257_v15  ;;  %v1419_v15 = vld [vmem:[%s3641_s9 + $0x18] sm:$0xff] }
 0x1f8   : > { %1063 = vst [vmem:[%s3198_s26 + $0x20] sm:$0xff] %v1047_v45  ;;  %v1048_v48 = vmax.f32 %v1000_v46, 0.0 }
 0x1f9   : > { %1066 = vst [vmem:[%s3198_s26 + $0x38] sm:$0xff] %v1050_v47  ;;  %v1078_v49 = vpack.c.bf16 %v1050_v47, %v1049_v42  ;;  %2662 = vmatprep.subr.bf16.mxu1 %v1262_v17 }
 0x1fa   : > { %1064 = vst [vmem:[%s3198_s26 + $0x28] sm:$0xff] %v1048_v48  ;;  %v1077_v50 = vpack.c.bf16 %v1048_v48, %v1047_v45  ;;  %v2489_v51 = vpop.f32.mrb[8].mxu1  ;;  %2530 = vmatpush3.bf16.msra.mxu0 %v1260_v18  ;;  %2666 = vmatpush3.bf16.msra.mxu1 %v1262_v17  ;;  %v3237_v18 = vld [vmem:[%s3697_s6] ss:$0 sm:$0xff] }
 0x1fb   : > { %v1021_v52 = vadd.f32 %v2489_v51, %v3190_v22  ;;  %v1012_v53 = vpop.f32.mrb[9].mxu1  ;;  %2531 = vmatprep.subr.bf16.mxu0 %v1261_v21 }
 0x1fc   : > { %v1013_v54 = vadd.f32 %v3190_v22, %v1012_v53  ;;  %v2490_v55 = vpop.f32.mrb[10].mxu1  ;;  %2515 = vmatprep.mubr.bf16.mxu0 %v1077_v50 }
 0x1fd   : > { %v1053_v56 = vmax.f32 %v1021_v52, 0.0  ;;  %v1024_v57 = vadd.f32 %v2490_v55, %v3190_v22  ;;  %v1015_v58 = vpop.f32.mrb[11].mxu1  ;;  %2516 = vmatmul.mubr.bf16.gmra.mrb[20].mxu0 %v1078_v49 }
 0x1fe   : > { %v1051_v59 = vmax.f32 %v1013_v54, 0.0  ;;  %v1016_v60 = vadd.f32 %v3190_v22, %v1015_v58  ;;  %2532 = vmatpush3.bf16.msra.mxu0 %v1261_v21 }
 0x1ff   : > { %1069 = vst [vmem:[%s3198_s26 + $0x50] sm:$0xff] %v1053_v56  ;;  %v1054_v61 = vmax.f32 %v1024_v57, 0.0  ;;  %2533 = vmatprep.subr.bf16.mxu0 %v1262_v17 }
 0x200   : > { %1067 = vst [vmem:[%s3198_s26 + $0x40] sm:$0xff] %v1051_v59  ;;  %v1052_v62 = vmax.f32 %v1016_v60, 0.0 }
 0x201   : > { %1070 = vst [vmem:[%s3198_s26 + $0x58] sm:$0xff] %v1054_v61  ;;  %v1080_v63 = vpack.c.bf16 %v1054_v61, %v1053_v56 }
 0x202   : > { %1068 = vst [vmem:[%s3198_s26 + $0x48] sm:$0xff] %v1052_v62  ;;  %v1079_v0 = vpack.c.bf16 %v1052_v62, %v1051_v59  ;;  %v2493_v1 = vpop.f32.mrb[12].mxu1  ;;  %2534 = vmatpush3.bf16.msra.mxu0 %v1262_v17  ;;  %v1574_v17 = vld [vmem:[%s3643_s11] sm:$0xff] }
 0x203   : > { %v1037_v2 = vadd.f32 %v2493_v1, %v3190_v22  ;;  %v1028_v3 = vpop.f32.mrb[13].mxu1 }
 0x204   : > { %v1029_v4 = vadd.f32 %v3190_v22, %v1028_v3  ;;  %v2494_v5 = vpop.f32.mrb[14].mxu1  ;;  %2519 = vmatprep.mubr.bf16.mxu0 %v1079_v0 }
 0x205   : > { %v1057_v6 = vmax.f32 %v1037_v2, 0.0  ;;  %v1040_v7 = vadd.f32 %v2494_v5, %v3190_v22  ;;  %v1031_v8 = vpop.f32.mrb[15].mxu1  ;;  %2520 = vmatmul.mubr.bf16.gmra.mrb[24].mxu0 %v1080_v63 }
 0x206   : > { %v1055_v9 = vmax.f32 %v1029_v4, 0.0  ;;  %v1032_v10 = vadd.f32 %v3190_v22, %v1031_v8 }
 0x207   : > { %1073 = vst [vmem:[%s3198_s26 + $0x70] sm:$0xff] %v1057_v6  ;;  %v1058_v11 = vmax.f32 %v1040_v7, 0.0 }
 0x208   : > { %1071 = vst [vmem:[%s3198_s26 + $0x60] sm:$0xff] %v1055_v9  ;;  %v1056_v12 = vmax.f32 %v1032_v10, 0.0 }
 0x209   : > { %1074 = vst [vmem:[%s3198_s26 + $0x78] sm:$0xff] %v1058_v11  ;;  %v1082_v13 = vpack.c.bf16 %v1058_v11, %v1057_v6  ;;  %v1416_v11 = vld [vmem:[%s3641_s9] sm:$0xff] }
 0x20a   : > { %1072 = vst [vmem:[%s3198_s26 + $0x68] sm:$0xff] %v1056_v12  ;;  %v1081_v14 = vpack.c.bf16 %v1056_v12, %v1055_v9  ;;  %v1417_v12 = vld [vmem:[%s3641_s9 + $0x8] sm:$0xff] }
 0x20c   : > { %2523 = vmatprep.mubr.bf16.mxu0 %v1081_v14  ;;  %v1418_v14 = vld [vmem:[%s3641_s9 + $0x10] sm:$0xff] }
 0x20d   : > { %2524 = vmatmul.mubr.bf16.gmra.mrb[28].mxu0 %v1082_v13  ;;  %v1420_v13 = vpack.c.bf16 %v1417_v12, %v1416_v11  ;;  %v1421_v16 = vpack.c.bf16 %v1419_v15, %v1418_v14  ;;  %v1742_v12 = vld [vmem:[%s3645_s13 + $0x20] sm:$0xff]  ;;  %v1744_v15 = vld [vmem:[%s3645_s13 + $0x30] sm:$0xff] }
 0x20f   : > { %2551 = vmatprep.subr.bf16.mxu0 %v1420_v13 }
 0x2c8   : > { %v2513_v19 = vpop.f32.mrb[16].mxu0 }
 0x2c9   : > { %v1157_v20 = vadd.f32 %v2513_v19, %v3237_v18  ;;  %v1148_v21 = vpop.f32.mrb[17].mxu0  ;;  %v1576_v19 = vld [vmem:[%s3643_s11 + $0x10] sm:$0xff] }
 0x2ca   : > { %v1149_v22 = vadd.f32 %v3237_v18, %v1148_v21  ;;  %v2514_v23 = vpop.f32.mrb[18].mxu0  ;;  %v1577_v21 = vld [vmem:[%s3643_s11 + $0x18] sm:$0xff] }
 0x2cb   : > { %v1213_v24 = vmax.f32 %v1157_v20, 0.0  ;;  %v1160_v25 = vadd.f32 %v2514_v23, %v3237_v18  ;;  %v1151_v26 = vpop.f32.mrb[19].mxu0  ;;  %v1578_v23 = vld [vmem:[%s3643_s11 + $0x20] sm:$0xff] }
 0x2cc   : > { %v1211_v27 = vmax.f32 %v1149_v22, 0.0  ;;  %v1152_v28 = vadd.f32 %v3237_v18, %v1151_v26  ;;  %v1583_v22 = vpack.c.bf16 %v1577_v21, %v1576_v19  ;;  %v2290_v26 = vld [vmem:[%s3698_s8] ss:$0 sm:$0xff]  ;;  %v1747_v19 = vld [vmem:[%s3645_s13 + $0x48] sm:$0xff]  ;;  %v1748_v21 = vld [vmem:[%s3645_s13 + $0x50] sm:$0xff] }
 0x2cd   : > { %1229 = vst.msk [vmem:[%s3244_s23 + $0x10] sm:$0xff] %vm753_vm0, %v1213_v24  ;;  %v1214_v29 = vmax.f32 %v1160_v25, 0.0 }
 0x2ce   : > { %1227 = vst.msk [vmem:[%s3244_s23] sm:$0xff] %vm753_vm0, %v1211_v27  ;;  %v1212_v30 = vmax.f32 %v1152_v28, 0.0 }
 0x2cf   : > { %1230 = vst.msk [vmem:[%s3244_s23 + $0x18] sm:$0xff] %vm753_vm0, %v1214_v29  ;;  %v1244_v31 = vpack.c.bf16 %v1214_v29, %v1213_v24  ;;  %v1579_v24 = vld [vmem:[%s3643_s11 + $0x28] sm:$0xff] }
 0x2d0   : > { %1228 = vst.msk [vmem:[%s3244_s23 + $0x8] sm:$0xff] %vm753_vm0, %v1212_v30  ;;  %v1243_v32 = vpack.c.bf16 %v1212_v30, %v1211_v27  ;;  %v2517_v33 = vpop.f32.mrb[20].mxu0  ;;  %v1584_v25 = vpack.c.bf16 %v1579_v24, %v1578_v23  ;;  %v2299_v24 = vld [vmem:[%s3642_s10] ss:$0 sm:$0xff] }
 0x2d1   : > { %v1173_v34 = vadd.f32 %v2517_v33, %v3237_v18  ;;  %v1164_v35 = vpop.f32.mrb[21].mxu0 }
 0x2d2   : > { %v1165_v36 = vadd.f32 %v3237_v18, %v1164_v35  ;;  %v2518_v37 = vpop.f32.mrb[22].mxu0  ;;  %2535 = vmatprep.mubr.msk.bf16.mxu0 %vm753_vm0, %v1243_v32 }
 0x2d3   : > { %v1217_v38 = vmax.f32 %v1173_v34, 0.0  ;;  %v1176_v39 = vadd.f32 %v2518_v37, %v3237_v18  ;;  %v1167_v40 = vpop.f32.mrb[23].mxu0  ;;  %2536 = vmatmul.mubr.msk.bf16.vlgmr.msra.gmra.mrb[32].mxu0 %vm753_vm0, %v1244_v31 }
 0x2d4   : > { %v1215_v41 = vmax.f32 %v1165_v36, 0.0  ;;  %v1168_v42 = vadd.f32 %v3237_v18, %v1167_v40  ;;  %2552 = vmatpush3.bf16.msra.mxu0 %v1420_v13  ;;  %v1743_v13 = vld [vmem:[%s3645_s13 + $0x28] sm:$0xff] }
 0x2d5   : > { %1233 = vst.msk [vmem:[%s3244_s23 + $0x30] sm:$0xff] %vm753_vm0, %v1217_v38  ;;  %v1218_v43 = vmax.f32 %v1176_v39, 0.0  ;;  %2553 = vmatprep.subr.bf16.mxu0 %v1421_v16  ;;  %v1756_v14 = vpack.c.bf16 %v1743_v13, %v1742_v12 }
 0x2d6   : > { %1231 = vst.msk [vmem:[%s3244_s23 + $0x20] sm:$0xff] %vm753_vm0, %v1215_v41  ;;  %v1216_v44 = vmax.f32 %v1168_v42, 0.0 }
 0x2d7   : > { %1234 = vst.msk [vmem:[%s3244_s23 + $0x38] sm:$0xff] %vm753_vm0, %v1218_v43  ;;  %v1246_v45 = vpack.c.bf16 %v1218_v43, %v1217_v38 }
 0x2d8   : > { %1232 = vst.msk [vmem:[%s3244_s23 + $0x28] sm:$0xff] %vm753_vm0, %v1216_v44  ;;  %v1245_v46 = vpack.c.bf16 %v1216_v44, %v1215_v41  ;;  %v2521_v47 = vpop.f32.mrb[24].mxu0  ;;  %2554 = vmatpush3.bf16.msra.mxu0 %v1421_v16  ;;  %v1745_v16 = vld [vmem:[%s3645_s13 + $0x38] sm:$0xff] }
 0x2d9   : > { %v1189_v48 = vadd.f32 %v2521_v47, %v3237_v18  ;;  %v1180_v49 = vpop.f32.mrb[25].mxu0 }
 0x2da   : > { %v1181_v50 = vadd.f32 %v3237_v18, %v1180_v49  ;;  %v2522_v51 = vpop.f32.mrb[26].mxu0  ;;  %2539 = vmatprep.mubr.msk.bf16.mxu1 %vm753_vm0, %v1245_v46 }
 0x2db   : > { %v1221_v52 = vmax.f32 %v1189_v48, 0.0  ;;  %v1192_v53 = vadd.f32 %v2522_v51, %v3237_v18  ;;  %v1183_v54 = vpop.f32.mrb[27].mxu0  ;;  %2540 = vmatmul.mubr.msk.bf16.vlgmr.msra.gmra.mrb[16].mxu1 %vm753_vm0, %v1246_v45 }
 0x2dc   : > { %v1219_v55 = vmax.f32 %v1181_v50, 0.0  ;;  %v1184_v56 = vadd.f32 %v3237_v18, %v1183_v54 }
 0x2dd   : > { %1237 = vst.msk [vmem:[%s3244_s23 + $0x50] sm:$0xff] %vm753_vm0, %v1221_v52  ;;  %v1222_v57 = vmax.f32 %v1192_v53, 0.0 }
 0x2de   : > { %1235 = vst.msk [vmem:[%s3244_s23 + $0x40] sm:$0xff] %vm753_vm0, %v1219_v55  ;;  %v1220_v58 = vmax.f32 %v1184_v56, 0.0 }
 0x2df   : > { %1238 = vst.msk [vmem:[%s3244_s23 + $0x58] sm:$0xff] %vm753_vm0, %v1222_v57  ;;  %v1248_v59 = vpack.c.bf16 %v1222_v57, %v1221_v52 }
 0x2e0   : > { %1236 = vst.msk [vmem:[%s3244_s23 + $0x48] sm:$0xff] %vm753_vm0, %v1220_v58  ;;  %v1247_v60 = vpack.c.bf16 %v1220_v58, %v1219_v55  ;;  %v2525_v61 = vpop.f32.mrb[28].mxu0 }
 0x2e1   : > { %v1205_v62 = vadd.f32 %v2525_v61, %v3237_v18  ;;  %v1196_v63 = vpop.f32.mrb[29].mxu0 }
 0x2e2   : > { %v1197_v0 = vadd.f32 %v3237_v18, %v1196_v63  ;;  %v2526_v1 = vpop.f32.mrb[30].mxu0  ;;  %2543 = vmatprep.mubr.msk.bf16.mxu1 %vm753_vm0, %v1247_v60 }
 0x2e3   : > { %v1225_v2 = vmax.f32 %v1205_v62, 0.0  ;;  %v1208_v3 = vadd.f32 %v2526_v1, %v3237_v18  ;;  %v1199_v4 = vpop.f32.mrb[31].mxu0  ;;  %2544 = vmatmul.mubr.msk.bf16.gmra.mrb[20].mxu1 %vm753_vm0, %v1248_v59 }
 0x2e4   : > { %v1223_v5 = vmax.f32 %v1197_v0, 0.0  ;;  %v1200_v6 = vadd.f32 %v3237_v18, %v1199_v4  ;;  %v1575_v18 = vld [vmem:[%s3643_s11 + $0x8] sm:$0xff]  ;;  %v1581_v4 = vld [vmem:[%s3643_s11 + $0x38] sm:$0xff] }
 0x2e5   : > { %1241 = vst.msk [vmem:[%s3244_s23 + $0x70] sm:$0xff] %vm753_vm0, %v1225_v2  ;;  %v1226_v7 = vmax.f32 %v1208_v3, 0.0  ;;  %v1582_v20 = vpack.c.bf16 %v1575_v18, %v1574_v17  ;;  %v1580_v3 = vld [vmem:[%s3643_s11 + $0x30] sm:$0xff]  ;;  %v1757_v17 = vpack.c.bf16 %v1745_v16, %v1744_v15  ;;  %v1746_v18 = vld [vmem:[%s3645_s13 + $0x40] sm:$0xff] }
 0x2e6   : > { %1239 = vst.msk [vmem:[%s3244_s23 + $0x60] sm:$0xff] %vm753_vm0, %v1223_v5  ;;  %v1224_v8 = vmax.f32 %v1200_v6, 0.0  ;;  %v1738_v6 = vld [vmem:[%s3645_s13] sm:$0xff] }
 0x2e7   : > { %1242 = vst.msk [vmem:[%s3244_s23 + $0x78] sm:$0xff] %vm753_vm0, %v1226_v7  ;;  %v1250_v9 = vpack.c.bf16 %v1226_v7, %v1225_v2  ;;  %2571 = vmatprep.subr.bf16.mxu1 %v1582_v20  ;;  %v1739_v7 = vld [vmem:[%s3645_s13 + $0x8] sm:$0xff] }
 0x2e8   : > { %1240 = vst.msk [vmem:[%s3244_s23 + $0x68] sm:$0xff] %vm753_vm0, %v1224_v8  ;;  %v1249_v10 = vpack.c.bf16 %v1224_v8, %v1223_v5  ;;  %2572 = vmatpush3.bf16.msra.mxu1 %v1582_v20  ;;  %v1585_v5 = vpack.c.bf16 %v1581_v4, %v1580_v3  ;;  %v1740_v8 = vld [vmem:[%s3645_s13 + $0x10] sm:$0xff]  ;;  %v1758_v20 = vpack.c.bf16 %v1747_v19, %v1746_v18  ;;  %v1751_v18 = vld [vmem:[%s3645_s13 + $0x68] sm:$0xff] }
 0x2e9   : > { %2573 = vmatprep.subr.bf16.mxu1 %v1583_v22 }
 0x2ea   : > { %2547 = vmatprep.mubr.msk.bf16.mxu1 %vm753_vm0, %v1249_v10  ;;  %v1741_v10 = vld [vmem:[%s3645_s13 + $0x18] sm:$0xff] }
 0x2eb   : > { %2548 = vmatmul.mubr.msk.bf16.gmra.mrb[24].mxu1 %vm753_vm0, %v1250_v9  ;;  %v1754_v9 = vpack.c.bf16 %v1739_v7, %v1738_v6  ;;  %v1755_v11 = vpack.c.bf16 %v1741_v10, %v1740_v8 }
 0x2ec   : > { %2574 = vmatpush3.bf16.msra.mxu1 %v1583_v22  ;;  %v1749_v22 = vld [vmem:[%s3645_s13 + $0x58] sm:$0xff] }
 0x2ed   : > { %2575 = vmatprep.subr.bf16.mxu1 %v1584_v25  ;;  %2595 = vmatprep.subr.bf16.mxu0 %v1754_v9  ;;  %v1759_v23 = vpack.c.bf16 %v1749_v22, %v1748_v21  ;;  %v1753_v21 = vld [vmem:[%s3645_s13 + $0x78] sm:$0xff] }
 0x2f0   : > { %2576 = vmatpush3.bf16.msra.mxu1 %v1584_v25 }
 0x2f1   : > { %2577 = vmatprep.subr.bf16.mxu1 %v1585_v5 }
 0x2f4   : > { %2578 = vmatpush3.bf16.msra.mxu1 %v1585_v5 }
 0x3a6   : > { %v2537_v27 = vpop.f32.mrb[32].mxu0 }
 0x3a7   : > { %v1337_v28 = vadd.f32 %v2537_v27, %v2290_v26  ;;  %v1328_v29 = vpop.f32.mrb[33].mxu0 }
 0x3a8   : > { %v1329_v30 = vadd.f32 %v2290_v26, %v1328_v29  ;;  %v2538_v31 = vpop.f32.mrb[34].mxu0 }
 0x3a9   : > { %1394 = vst.msk [vmem:[%s3338_s19 + $0x10] sm:$0xff] %vm1391_vm1, %v1337_v28  ;;  %v1340_v32 = vadd.f32 %v2538_v31, %v2290_v26  ;;  %v1331_v33 = vpop.f32.mrb[35].mxu0 }
 0x3aa   : > { %1392 = vst.msk [vmem:[%s3338_s19] sm:$0xff] %vm1391_vm1, %v1329_v30  ;;  %v1332_v34 = vadd.f32 %v2290_v26, %v1331_v33 }
 0x3ab   : > { %1395 = vst.msk [vmem:[%s3338_s19 + $0x18] sm:$0xff] %vm1391_vm1, %v1340_v32  ;;  %v1409_v35 = vpack.c.bf16 %v1340_v32, %v1337_v28 }
 0x3ac   : > { %1393 = vst.msk [vmem:[%s3338_s19 + $0x8] sm:$0xff] %vm1391_vm1, %v1332_v34  ;;  %v1408_v36 = vpack.c.bf16 %v1332_v34, %v1329_v30 }
 0x3ae   : > { %v2541_v37 = vpop.f32.mrb[16].mxu1  ;;  %2555 = vmatprep.mubr.msk.bf16.mxu0 %vm1391_vm1, %v1408_v36 }
 0x3af   : > { %v1353_v38 = vadd.f32 %v2541_v37, %v2290_v26  ;;  %v1344_v39 = vpop.f32.mrb[17].mxu1  ;;  %2556 = vmatmul.mubr.msk.bf16.vlgmr.msra.gmra.mrb[36].mxu0 %vm1391_vm1, %v1409_v35 }
 0x3b0   : > { %v1345_v40 = vadd.f32 %v2290_v26, %v1344_v39  ;;  %v2542_v41 = vpop.f32.mrb[18].mxu1  ;;  %2596 = vmatpush3.bf16.msra.mxu0 %v1754_v9 }
 0x3b1   : > { %1398 = vst.msk [vmem:[%s3338_s19 + $0x30] sm:$0xff] %vm1391_vm1, %v1353_v38  ;;  %v1356_v42 = vadd.f32 %v2542_v41, %v2290_v26  ;;  %v1347_v43 = vpop.f32.mrb[19].mxu1  ;;  %2597 = vmatprep.subr.bf16.mxu0 %v1755_v11 }
 0x3b2   : > { %1396 = vst.msk [vmem:[%s3338_s19 + $0x20] sm:$0xff] %vm1391_vm1, %v1345_v40  ;;  %v1348_v44 = vadd.f32 %v2290_v26, %v1347_v43 }
 0x3b3   : > { %1399 = vst.msk [vmem:[%s3338_s19 + $0x38] sm:$0xff] %vm1391_vm1, %v1356_v42  ;;  %v1411_v45 = vpack.c.bf16 %v1356_v42, %v1353_v38 }
 0x3b4   : > { %1397 = vst.msk [vmem:[%s3338_s19 + $0x28] sm:$0xff] %vm1391_vm1, %v1348_v44  ;;  %v1410_v46 = vpack.c.bf16 %v1348_v44, %v1345_v40  ;;  %2598 = vmatpush3.bf16.msra.mxu0 %v1755_v11 }
 0x3b5   : > { %2599 = vmatprep.subr.bf16.mxu0 %v1756_v14 }
 0x3b6   : > { %v2545_v47 = vpop.f32.mrb[20].mxu1  ;;  %2559 = vmatprep.mubr.msk.bf16.mxu0 %vm1391_vm1, %v1410_v46 }
 0x3b7   : > { %v1369_v48 = vadd.f32 %v2545_v47, %v2290_v26  ;;  %v1360_v49 = vpop.f32.mrb[21].mxu1  ;;  %2560 = vmatmul.mubr.msk.bf16.gmra.mrb[40].mxu0 %vm1391_vm1, %v1411_v45 }
 0x3b8   : > { %v1361_v50 = vadd.f32 %v2290_v26, %v1360_v49  ;;  %v2546_v51 = vpop.f32.mrb[22].mxu1  ;;  %2600 = vmatpush3.bf16.msra.mxu0 %v1756_v14 }
 0x3b9   : > { %1402 = vst.msk [vmem:[%s3338_s19 + $0x50] sm:$0xff] %vm1391_vm1, %v1369_v48  ;;  %v1372_v52 = vadd.f32 %v2546_v51, %v2290_v26  ;;  %v1363_v53 = vpop.f32.mrb[23].mxu1  ;;  %2601 = vmatprep.subr.bf16.mxu0 %v1757_v17 }
 0x3ba   : > { %1400 = vst.msk [vmem:[%s3338_s19 + $0x40] sm:$0xff] %vm1391_vm1, %v1361_v50  ;;  %v1364_v54 = vadd.f32 %v2290_v26, %v1363_v53 }
 0x3bb   : > { %1403 = vst.msk [vmem:[%s3338_s19 + $0x58] sm:$0xff] %vm1391_vm1, %v1372_v52  ;;  %v1413_v55 = vpack.c.bf16 %v1372_v52, %v1369_v48 }
 0x3bc   : > { %1401 = vst.msk [vmem:[%s3338_s19 + $0x48] sm:$0xff] %vm1391_vm1, %v1364_v54  ;;  %v1412_v56 = vpack.c.bf16 %v1364_v54, %v1361_v50  ;;  %2602 = vmatpush3.bf16.msra.mxu0 %v1757_v17  ;;  %v1750_v17 = vld [vmem:[%s3645_s13 + $0x60] sm:$0xff] }
 0x3bd   : > { %2603 = vmatprep.subr.bf16.mxu0 %v1758_v20  ;;  %v1760_v19 = vpack.c.bf16 %v1751_v18, %v1750_v17 }
 0x3be   : > { %v2549_v57 = vpop.f32.mrb[24].mxu1  ;;  %2563 = vmatprep.mubr.msk.bf16.mxu0 %vm1391_vm1, %v1412_v56 }
 0x3bf   : > { %v1385_v58 = vadd.f32 %v2549_v57, %v2290_v26  ;;  %v1376_v59 = vpop.f32.mrb[25].mxu1  ;;  %2564 = vmatmul.mubr.msk.bf16.gmra.mrb[44].mxu0 %vm1391_vm1, %v1413_v55 }
 0x3c0   : > { %v1377_v60 = vadd.f32 %v2290_v26, %v1376_v59  ;;  %v2550_v61 = vpop.f32.mrb[26].mxu1  ;;  %2604 = vmatpush3.bf16.msra.mxu0 %v1758_v20  ;;  %v1752_v20 = vld [vmem:[%s3645_s13 + $0x70] sm:$0xff] }
 0x3c1   : > { %1406 = vst.msk [vmem:[%s3338_s19 + $0x70] sm:$0xff] %vm1391_vm1, %v1385_v58  ;;  %v1388_v62 = vadd.f32 %v2550_v61, %v2290_v26  ;;  %v1379_v63 = vpop.f32.mrb[27].mxu1  ;;  %2605 = vmatprep.subr.bf16.mxu0 %v1759_v23  ;;  %v1761_v22 = vpack.c.bf16 %v1753_v21, %v1752_v20 }
 0x3c2   : > { %1404 = vst.msk [vmem:[%s3338_s19 + $0x60] sm:$0xff] %vm1391_vm1, %v1377_v60  ;;  %v1380_v0 = vadd.f32 %v2290_v26, %v1379_v63 }
 0x3c3   : > { %1407 = vst.msk [vmem:[%s3338_s19 + $0x78] sm:$0xff] %vm1391_vm1, %v1388_v62  ;;  %v1415_v1 = vpack.c.bf16 %v1388_v62, %v1385_v58 }
 0x3c4   : > { %1405 = vst.msk [vmem:[%s3338_s19 + $0x68] sm:$0xff] %vm1391_vm1, %v1380_v0  ;;  %v1414_v2 = vpack.c.bf16 %v1380_v0, %v1377_v60  ;;  %2606 = vmatpush3.bf16.msra.mxu0 %v1759_v23  ;;  %v1890_v23 = vld [vmem:[%s3647_s15] sm:$0xff]  ;;  %s2040_s19 = scalar_lea.sflag [#allocation3], %s3113_s16 }
 0x3c5   : > { %2607 = vmatprep.subr.bf16.mxu0 %v1760_v19 }
 0x3c6   : > { %2567 = vmatprep.mubr.msk.bf16.mxu0 %vm1391_vm1, %v1414_v2 }
 0x3c7   : > { %2568 = vmatmul.mubr.msk.bf16.gmra.mrb[48].mxu0 %vm1391_vm1, %v1415_v1 }
 0x3c8   : > { %2608 = vmatpush3.bf16.msra.mxu0 %v1760_v19 }
 0x3c9   : > { %2609 = vmatprep.subr.bf16.mxu0 %v1761_v22 }
 0x3cc   : > { %2610 = vmatpush3.bf16.msra.mxu0 %v1761_v22 }
 0x482   : > { %v2557_v25 = vpop.f32.mrb[36].mxu0 }
 0x483   : > { %v1496_v26 = vadd.f32 %v2557_v25, %v2299_v24  ;;  %v1487_v27 = vpop.f32.mrb[37].mxu0  ;;  %v1892_v25 = vld [vmem:[%s3647_s15 + $0x10] sm:$0xff] }
 0x484   : > { %v1488_v28 = vadd.f32 %v2299_v24, %v1487_v27  ;;  %v2558_v29 = vpop.f32.mrb[38].mxu0  ;;  %v1893_v27 = vld [vmem:[%s3647_s15 + $0x18] sm:$0xff] }
 0x485   : > { %v1499_v30 = vadd.f32 %v2558_v29, %v2299_v24  ;;  %v1490_v31 = vpop.f32.mrb[39].mxu0  ;;  %v1552_v33 = vmax.f32 %v1496_v26, 0.0  ;;  %v1894_v29 = vld [vmem:[%s3647_s15 + $0x20] sm:$0xff] }
 0x486   : > { %v1491_v32 = vadd.f32 %v2299_v24, %v1490_v31  ;;  %v1550_v35 = vmax.f32 %v1488_v28, 0.0  ;;  %v1907_v28 = vpack.c.bf16 %v1893_v27, %v1892_v25 }
 0x487   : > { %v1553_v34 = vmax.f32 %v1499_v30, 0.0  ;;  %v1895_v30 = vld [vmem:[%s3647_s15 + $0x28] sm:$0xff] }
 0x488   : > { %v1551_v36 = vmax.f32 %v1491_v32, 0.0  ;;  %v1908_v31 = vpack.c.bf16 %v1895_v30, %v1894_v29  ;;  %v1896_v32 = vld [vmem:[%s3647_s15 + $0x30] sm:$0xff] }
 0x489   : > { %v1567_v37 = vpack.c.bf16 %v1553_v34, %v1552_v33  ;;  %v1897_v33 = vld [vmem:[%s3647_s15 + $0x38] sm:$0xff] }
 0x48a   : > { %v1566_v38 = vpack.c.bf16 %v1551_v36, %v1550_v35  ;;  %v2561_v39 = vpop.f32.mrb[40].mxu0  ;;  %v1909_v34 = vpack.c.bf16 %v1897_v33, %v1896_v32  ;;  %v1898_v35 = vld [vmem:[%s3647_s15 + $0x40] sm:$0xff]  ;;  %v1899_v36 = vld [vmem:[%s3647_s15 + $0x48] sm:$0xff] }
 0x48b   : > { %v1512_v40 = vadd.f32 %v2561_v39, %v2299_v24  ;;  %v1503_v41 = vpop.f32.mrb[41].mxu0  ;;  %v1901_v39 = vld [vmem:[%s3647_s15 + $0x58] sm:$0xff] }
 0x48c   : > { %v1504_v42 = vadd.f32 %v2299_v24, %v1503_v41  ;;  %v2562_v43 = vpop.f32.mrb[42].mxu0  ;;  %2579 = vmatprep.mubr.msk.bf16.mxu1 %vm753_vm0, %v1566_v38  ;;  %v1900_v38 = vld [vmem:[%s3647_s15 + $0x50] sm:$0xff]  ;;  %v2308_v41 = vld [vmem:[%s3644_s12] ss:$0 sm:$0xff] }
 0x48d   : > { %v1515_v44 = vadd.f32 %v2562_v43, %v2299_v24  ;;  %v1506_v45 = vpop.f32.mrb[43].mxu0  ;;  %2580 = vmatmul.mubr.msk.bf16.vlgmr.msra.gmra.mrb[28].mxu1 %vm753_vm0, %v1567_v37  ;;  %v1556_v47 = vmax.f32 %v1512_v40, 0.0  ;;  %v1910_v37 = vpack.c.bf16 %v1899_v36, %v1898_v35  ;;  %v1911_v40 = vpack.c.bf16 %v1901_v39, %v1900_v38  ;;  %v1903_v35 = vld [vmem:[%s3647_s15 + $0x68] sm:$0xff]  ;;  %v1905_v38 = vld [vmem:[%s3647_s15 + $0x78] sm:$0xff] }
 0x48e   : > { %v1507_v46 = vadd.f32 %v2299_v24, %v1506_v45  ;;  %v1554_v49 = vmax.f32 %v1504_v42, 0.0 }
 0x48f   : > { %v1557_v48 = vmax.f32 %v1515_v44, 0.0 }
 0x490   : > { %v1555_v50 = vmax.f32 %v1507_v46, 0.0 }
 0x491   : > { %v1569_v51 = vpack.c.bf16 %v1557_v48, %v1556_v47 }
 0x492   : > { %v1568_v52 = vpack.c.bf16 %v1555_v50, %v1554_v49  ;;  %v2565_v53 = vpop.f32.mrb[44].mxu0 }
 0x493   : > { %v1528_v54 = vadd.f32 %v2565_v53, %v2299_v24  ;;  %v1519_v55 = vpop.f32.mrb[45].mxu0 }
 0x494   : > { %v1520_v56 = vadd.f32 %v2299_v24, %v1519_v55  ;;  %v2566_v57 = vpop.f32.mrb[46].mxu0  ;;  %2583 = vmatprep.mubr.msk.bf16.mxu1 %vm753_vm0, %v1568_v52 }
 0x495   : > { %v1531_v58 = vadd.f32 %v2566_v57, %v2299_v24  ;;  %v1522_v59 = vpop.f32.mrb[47].mxu0  ;;  %2584 = vmatmul.mubr.msk.bf16.gmra.mrb[32].mxu1 %vm753_vm0, %v1569_v51  ;;  %v1560_v61 = vmax.f32 %v1528_v54, 0.0 }
 0x496   : > { %v1523_v60 = vadd.f32 %v2299_v24, %v1522_v59  ;;  %v1558_v63 = vmax.f32 %v1520_v56, 0.0 }
 0x497   : > { %v1561_v62 = vmax.f32 %v1531_v58, 0.0 }
 0x498   : > { %v1559_v0 = vmax.f32 %v1523_v60, 0.0 }
 0x499   : > { %v1571_v1 = vpack.c.bf16 %v1561_v62, %v1560_v61 }
 0x49a   : > { %v1570_v2 = vpack.c.bf16 %v1559_v0, %v1558_v63  ;;  %v2569_v3 = vpop.f32.mrb[48].mxu0 }
 0x49b   : > { %v1544_v4 = vadd.f32 %v2569_v3, %v2299_v24  ;;  %v1535_v5 = vpop.f32.mrb[49].mxu0 }
 0x49c   : > { %v1536_v6 = vadd.f32 %v2299_v24, %v1535_v5  ;;  %v2570_v7 = vpop.f32.mrb[50].mxu0  ;;  %2587 = vmatprep.mubr.msk.bf16.mxu1 %vm753_vm0, %v1570_v2 }
 0x49d   : > { %v1547_v8 = vadd.f32 %v2570_v7, %v2299_v24  ;;  %v1538_v9 = vpop.f32.mrb[51].mxu0  ;;  %2588 = vmatmul.mubr.msk.bf16.gmra.mrb[36].mxu1 %vm753_vm0, %v1571_v1  ;;  %v1564_v11 = vmax.f32 %v1544_v4, 0.0 }
 0x49e   : > { %v1539_v10 = vadd.f32 %v2299_v24, %v1538_v9  ;;  %v1562_v13 = vmax.f32 %v1536_v6, 0.0  ;;  %v1891_v24 = vld [vmem:[%s3647_s15 + $0x8] sm:$0xff] }
 0x49f   : > { %v1565_v12 = vmax.f32 %v1547_v8, 0.0  ;;  %v1906_v26 = vpack.c.bf16 %v1891_v24, %v1890_v23 }
 0x4a0   : > { %v1563_v14 = vmax.f32 %v1539_v10, 0.0 }
 0x4a1   : > { %v1573_v15 = vpack.c.bf16 %v1565_v12, %v1564_v11  ;;  %2627 = vmatprep.subr.bf16.mxu1 %v1906_v26 }
 0x4a2   : > { %v1572_v16 = vpack.c.bf16 %v1563_v14, %v1562_v13  ;;  %2628 = vmatpush3.bf16.msra.mxu1 %v1906_v26 }
 0x4a3   : > { %2629 = vmatprep.subr.bf16.mxu1 %v1907_v28 }
 0x4a4   : > { %2591 = vmatprep.mubr.msk.bf16.mxu1 %vm753_vm0, %v1572_v16 }
 0x4a5   : > { %2592 = vmatmul.mubr.msk.bf16.gmra.mrb[40].mxu1 %vm753_vm0, %v1573_v15 }
 0x4a6   : > { %2630 = vmatpush3.bf16.msra.mxu1 %v1907_v28 }
 0x4a7   : > { %2631 = vmatprep.subr.bf16.mxu1 %v1908_v31 }
 0x4aa   : > { %2632 = vmatpush3.bf16.msra.mxu1 %v1908_v31 }
 0x4ab   : > { %2633 = vmatprep.subr.bf16.mxu1 %v1909_v34 }
 0x4ae   : > { %2634 = vmatpush3.bf16.msra.mxu1 %v1909_v34  ;;  %v1902_v34 = vld [vmem:[%s3647_s15 + $0x60] sm:$0xff] }
 0x4af   : > { %2635 = vmatprep.subr.bf16.mxu1 %v1910_v37  ;;  %v1912_v36 = vpack.c.bf16 %v1903_v35, %v1902_v34 }
 0x4b2   : > { %2636 = vmatpush3.bf16.msra.mxu1 %v1910_v37  ;;  %v1904_v37 = vld [vmem:[%s3647_s15 + $0x70] sm:$0xff] }
 0x4b3   : > { %2637 = vmatprep.subr.bf16.mxu1 %v1911_v40  ;;  %v1913_v39 = vpack.c.bf16 %v1905_v38, %v1904_v37 }
 0x4b6   : > { %2638 = vmatpush3.bf16.msra.mxu1 %v1911_v40  ;;  %v2317_v40 = vld [vmem:[%s3646_s14] ss:$0 sm:$0xff] }
 0x4b7   : > { %2639 = vmatprep.subr.bf16.mxu1 %v1912_v36 }
 0x4ba   : > { %2640 = vmatpush3.bf16.msra.mxu1 %v1912_v36 }
 0x4bb   : > { %2641 = vmatprep.subr.bf16.mxu1 %v1913_v39 }
 0x4be   : > { %2642 = vmatpush3.bf16.msra.mxu1 %v1913_v39 }
 0x560   : > { %v2581_v42 = vpop.f32.mrb[28].mxu1 }
 0x561   : > { %v1660_v43 = vadd.f32 %v2581_v42, %v2308_v41  ;;  %v1651_v44 = vpop.f32.mrb[29].mxu1 }
 0x562   : > { %v1652_v45 = vadd.f32 %v2308_v41, %v1651_v44  ;;  %v2582_v46 = vpop.f32.mrb[30].mxu1 }
 0x563   : > { %v1663_v47 = vadd.f32 %v2582_v46, %v2308_v41  ;;  %v1654_v48 = vpop.f32.mrb[31].mxu1  ;;  %v1716_v50 = vmax.f32 %v1660_v43, 0.0 }
 0x564   : > { %v1655_v49 = vadd.f32 %v2308_v41, %v1654_v48  ;;  %v1714_v52 = vmax.f32 %v1652_v45, 0.0 }
 0x565   : > { %v1717_v51 = vmax.f32 %v1663_v47, 0.0 }
 0x566   : > { %v1715_v53 = vmax.f32 %v1655_v49, 0.0 }
 0x567   : > { %v1731_v54 = vpack.c.bf16 %v1717_v51, %v1716_v50 }
 0x568   : > { %v1730_v55 = vpack.c.bf16 %v1715_v53, %v1714_v52  ;;  %v2585_v56 = vpop.f32.mrb[32].mxu1 }
 0x569   : > { %v1676_v57 = vadd.f32 %v2585_v56, %v2308_v41  ;;  %v1667_v58 = vpop.f32.mrb[33].mxu1 }
 0x56a   : > { %v1668_v59 = vadd.f32 %v2308_v41, %v1667_v58  ;;  %v2586_v60 = vpop.f32.mrb[34].mxu1  ;;  %2611 = vmatprep.mubr.bf16.mxu0 %v1730_v55 }
 0x56b   : > { %v1679_v61 = vadd.f32 %v2586_v60, %v2308_v41  ;;  %v1670_v62 = vpop.f32.mrb[35].mxu1  ;;  %2612 = vmatmul.mubr.bf16.vlgmr.msra.gmra.mrb[52].mxu0 %v1731_v54  ;;  %v1720_v0 = vmax.f32 %v1676_v57, 0.0 }
 0x56c   : > { %v1671_v63 = vadd.f32 %v2308_v41, %v1670_v62  ;;  %v1718_v2 = vmax.f32 %v1668_v59, 0.0 }
 0x56d   : > { %v1721_v1 = vmax.f32 %v1679_v61, 0.0 }
 0x56e   : > { %v1719_v3 = vmax.f32 %v1671_v63, 0.0 }
 0x56f   : > { %v1733_v4 = vpack.c.bf16 %v1721_v1, %v1720_v0 }
 0x570   : > { %v1732_v5 = vpack.c.bf16 %v1719_v3, %v1718_v2  ;;  %v2589_v6 = vpop.f32.mrb[36].mxu1 }
 0x571   : > { %v1692_v7 = vadd.f32 %v2589_v6, %v2308_v41  ;;  %v1683_v8 = vpop.f32.mrb[37].mxu1 }
 0x572   : > { %v1684_v9 = vadd.f32 %v2308_v41, %v1683_v8  ;;  %v2590_v10 = vpop.f32.mrb[38].mxu1  ;;  %2615 = vmatprep.mubr.bf16.mxu0 %v1732_v5 }
 0x573   : > { %v1695_v11 = vadd.f32 %v2590_v10, %v2308_v41  ;;  %v1686_v12 = vpop.f32.mrb[39].mxu1  ;;  %2616 = vmatmul.mubr.bf16.gmra.mrb[56].mxu0 %v1733_v4  ;;  %v1724_v14 = vmax.f32 %v1692_v7, 0.0 }
 0x574   : > { %v1687_v13 = vadd.f32 %v2308_v41, %v1686_v12  ;;  %v1722_v16 = vmax.f32 %v1684_v9, 0.0 }
 0x575   : > { %v1725_v15 = vmax.f32 %v1695_v11, 0.0 }
 0x576   : > { %v1723_v17 = vmax.f32 %v1687_v13, 0.0 }
 0x577   : > { %v1735_v18 = vpack.c.bf16 %v1725_v15, %v1724_v14 }
 0x578   : > { %v1734_v19 = vpack.c.bf16 %v1723_v17, %v1722_v16  ;;  %v2593_v20 = vpop.f32.mrb[40].mxu1 }
 0x579   : > { %v1708_v21 = vadd.f32 %v2593_v20, %v2308_v41  ;;  %v1699_v22 = vpop.f32.mrb[41].mxu1 }
 0x57a   : > { %v1700_v23 = vadd.f32 %v2308_v41, %v1699_v22  ;;  %v2594_v24 = vpop.f32.mrb[42].mxu1  ;;  %2619 = vmatprep.mubr.bf16.mxu0 %v1734_v19 }
 0x57b   : > { %v1711_v25 = vadd.f32 %v2594_v24, %v2308_v41  ;;  %v1702_v26 = vpop.f32.mrb[43].mxu1  ;;  %2620 = vmatmul.mubr.bf16.gmra.mrb[60].mxu0 %v1735_v18  ;;  %v1728_v28 = vmax.f32 %v1708_v21, 0.0 }
 0x57c   : > { %v1703_v27 = vadd.f32 %v2308_v41, %v1702_v26  ;;  %v1726_v30 = vmax.f32 %v1700_v23, 0.0 }
 0x57d   : > { %v1729_v29 = vmax.f32 %v1711_v25, 0.0 }
 0x57e   : > { %v1727_v31 = vmax.f32 %v1703_v27, 0.0 }
 0x57f   : > { %v1737_v32 = vpack.c.bf16 %v1729_v29, %v1728_v28 }
 0x580   : > { %v1736_v33 = vpack.c.bf16 %v1727_v31, %v1726_v30 }
 0x582   : > { %2623 = vmatprep.mubr.bf16.mxu0 %v1736_v33 }
 0x583   : > { %2624 = vmatmul.mubr.bf16.gmra.mrb[64].mxu0 %v1737_v32 }
 0x63e   : > { %v2613_v41 = vpop.f32.mrb[52].mxu0 }
 0x63f   : > { %v1812_v42 = vadd.f32 %v2613_v41, %v2317_v40  ;;  %v1803_v43 = vpop.f32.mrb[53].mxu0 }
 0x640   : > { %v1804_v44 = vadd.f32 %v2317_v40, %v1803_v43  ;;  %v2614_v45 = vpop.f32.mrb[54].mxu0 }
 0x641   : > { %v1815_v46 = vadd.f32 %v2614_v45, %v2317_v40  ;;  %v1806_v47 = vpop.f32.mrb[55].mxu0  ;;  %v1868_v49 = vmax.f32 %v1812_v42, 0.0 }
 0x642   : > { %v1807_v48 = vadd.f32 %v2317_v40, %v1806_v47  ;;  %v1866_v51 = vmax.f32 %v1804_v44, 0.0 }
 0x643   : > { %v1869_v50 = vmax.f32 %v1815_v46, 0.0 }
 0x644   : > { %v1867_v52 = vmax.f32 %v1807_v48, 0.0 }
 0x645   : > { %v1883_v53 = vpack.c.bf16 %v1869_v50, %v1868_v49 }
 0x646   : > { %v1882_v54 = vpack.c.bf16 %v1867_v52, %v1866_v51  ;;  %v2617_v55 = vpop.f32.mrb[56].mxu0 }
 0x647   : > { %v1828_v56 = vadd.f32 %v2617_v55, %v2317_v40  ;;  %v1819_v57 = vpop.f32.mrb[57].mxu0 }
 0x648   : > { %v1820_v58 = vadd.f32 %v2317_v40, %v1819_v57  ;;  %v2618_v59 = vpop.f32.mrb[58].mxu0  ;;  %2643 = vmatprep.mubr.bf16.mxu1 %v1882_v54 }
 0x649   : > { %v1831_v60 = vadd.f32 %v2618_v59, %v2317_v40  ;;  %v1822_v61 = vpop.f32.mrb[59].mxu0  ;;  %2644 = vmatmul.mubr.bf16.vlgmr.msra.gmra.mrb[44].mxu1 %v1883_v53  ;;  %v1872_v63 = vmax.f32 %v1828_v56, 0.0 }
 0x64a   : > { %v1823_v62 = vadd.f32 %v2317_v40, %v1822_v61  ;;  %v1870_v1 = vmax.f32 %v1820_v58, 0.0 }
 0x64b   : > { %v1873_v0 = vmax.f32 %v1831_v60, 0.0 }
 0x64c   : > { %v1871_v2 = vmax.f32 %v1823_v62, 0.0 }
 0x64d   : > { %v1885_v3 = vpack.c.bf16 %v1873_v0, %v1872_v63 }
 0x64e   : > { %v1884_v4 = vpack.c.bf16 %v1871_v2, %v1870_v1  ;;  %v2621_v5 = vpop.f32.mrb[60].mxu0 }
 0x64f   : > { %v1844_v6 = vadd.f32 %v2621_v5, %v2317_v40  ;;  %v1835_v7 = vpop.f32.mrb[61].mxu0 }
 0x650   : > { %v1836_v8 = vadd.f32 %v2317_v40, %v1835_v7  ;;  %v2622_v9 = vpop.f32.mrb[62].mxu0  ;;  %2647 = vmatprep.mubr.bf16.mxu1 %v1884_v4 }
 0x651   : > { %v1847_v10 = vadd.f32 %v2622_v9, %v2317_v40  ;;  %v1838_v11 = vpop.f32.mrb[63].mxu0  ;;  %2648 = vmatmul.mubr.bf16.gmra.mrb[48].mxu1 %v1885_v3  ;;  %v1876_v13 = vmax.f32 %v1844_v6, 0.0 }
 0x652   : > { %v1839_v12 = vadd.f32 %v2317_v40, %v1838_v11  ;;  %v1874_v15 = vmax.f32 %v1836_v8, 0.0 }
 0x653   : > { %v1877_v14 = vmax.f32 %v1847_v10, 0.0 }
 0x654   : > { %v1875_v16 = vmax.f32 %v1839_v12, 0.0 }
 0x655   : > { %v1887_v17 = vpack.c.bf16 %v1877_v14, %v1876_v13 }
 0x656   : > { %v1886_v18 = vpack.c.bf16 %v1875_v16, %v1874_v15  ;;  %v2625_v19 = vpop.f32.mrb[64].mxu0 }
 0x657   : > { %v1860_v20 = vadd.f32 %v2625_v19, %v2317_v40  ;;  %v1851_v21 = vpop.f32.mrb[65].mxu0 }
 0x658   : > { %v1852_v22 = vadd.f32 %v2317_v40, %v1851_v21  ;;  %v2626_v23 = vpop.f32.mrb[66].mxu0  ;;  %2651 = vmatprep.mubr.bf16.mxu1 %v1886_v18 }
 0x659   : > { %v1863_v24 = vadd.f32 %v2626_v23, %v2317_v40  ;;  %v1854_v25 = vpop.f32.mrb[67].mxu0  ;;  %2652 = vmatmul.mubr.bf16.gmra.mrb[52].mxu1 %v1887_v17  ;;  %v1880_v27 = vmax.f32 %v1860_v20, 0.0 }
 0x65a   : > { %v1855_v26 = vadd.f32 %v2317_v40, %v1854_v25  ;;  %v1878_v29 = vmax.f32 %v1852_v22, 0.0 }
 0x65b   : > { %v1881_v28 = vmax.f32 %v1863_v24, 0.0 }
 0x65c   : > { %v1879_v30 = vmax.f32 %v1855_v26, 0.0 }
 0x65d   : > { %v1889_v31 = vpack.c.bf16 %v1881_v28, %v1880_v27 }
 0x65e   : > { %v1888_v32 = vpack.c.bf16 %v1879_v30, %v1878_v29 }
 0x660   : > { %2655 = vmatprep.mubr.bf16.mxu1 %v1888_v32 }
 0x661   : > { %2656 = vmatmul.mubr.bf16.gmra.mrb[56].mxu1 %v1889_v31 }
 0x662   : > { %2726 = shalt.err (!%p2723_p3)
}
 0x663   : > { %s2727_s23 = scalar_lea.hbm %s3506_s22, 2048  ;;  %s2731_s4 = scalar_lea.hbm %s3650_s18, 4096 }
 0x664   : > { %p2728_p4 = scmp.ne.s32.totalorder %s3506_s22, %s2727_s23  ;;  %p2732_p9 = scmp.lt.u32.totalorder %s3506_s22, %s3650_s18 }
 0x665   : > { %p2733_p10 = scmp.lt.u32.totalorder %s2731_s4, %s2727_s23  ;;  %p2735_p12 = scmp.lt.u32.totalorder %s2727_s23, %s3506_s22 }
 0x666   : > { %p2729_p7 = pnand %p2728_p4, %p2961_p5 }
 0x667   : > { %p2734_p11 = por %p2733_p10, %p2732_p9 }
 0x668   : > { %p2730_p8 = pneg %p2729_p7 }
 0x669   : > { %p2736_p13 = por %p2735_p12, %p2734_p11 }
 0x66b   : > { %p2737_p0 = pnand %p2736_p13, %p2730_p8 }
 0x66d   : > { %2740 = shalt.err (!%p2737_p0)
}
 0x66e   : > { %s2810_s24 = smov 128   ;;  %s2811_s29 = smov 8  }
 0x66f   : > { %2667 = dma.vmem_to_hbm [thread:$0]  (%p2961_p5), %s3508_s1, 2048, %s3506_s22, %s2040_s19, %s2810_s24, %s2810_s24, %s2811_s29  }
 0x670   : > { %s3699_s28 = sshll.u32 %s2944_s3, 11  ;;  %s3700_s0 = sld [smem:[#allocation25_spill]] }
 0x671   : > { %s2088_s2 = sshll.u32 %s3198_s26, 4  ;;  %s2045_s6 = scalar_lea.sflag [#allocation5], %s3113_s16  ;;  %s3545_s2 = int_to_ptr.vmem [resolvable:$true] %s2088_s2 }
 0x672   : > { %s2741_s7 = scalar_lea.vmem %s3545_s2, 2048  ;;  %s2812_s8 = smov [#allocation4]  }
 0x673   : > { %p2742_p1 = scmp.ne.s32.totalorder %s3545_s2, %s2741_s7  ;;  %s2745_s1 = sshll.u32 %s2812_s8, 4  ;;  %s2746_s1 = int_to_ptr.vmem [resolvable:$false] %s2745_s1 }
 0x674   : > { %s2747_s3 = scalar_lea.vmem %s2746_s1, 4096  ;;  %p2748_p4 = scmp.lt.s32.totalorder %s3545_s2, %s2746_s1 }
 0x675   : > { %p2743_p2 = pnand %p2742_p1, %p2961_p5  ;;  %p2749_p7 = scmp.lt.s32.totalorder %s2747_s3, %s2741_s7 }
 0x676   : > { %s3542_s4 = scalar_lea.hbm %s3700_s0, %s3699_s28 }
 0x677   : > { %p2744_p3 = pneg %p2743_p2  ;;  %p2750_p8 = por %p2749_p7, %p2748_p4 }
 0x679   : > { %p2751_p9 = pnand %p2750_p8, %p2744_p3 }
 0x67b   : > { %2754 = shalt.err (!%p2751_p9)
}
 0x67c   : > { %s2755_s26 = scalar_lea.hbm %s3542_s4, 2048  ;;  %s2759_s8 = scalar_lea.hbm %s3700_s0, 4096 }
 0x67d   : > { %p2756_p10 = scmp.ne.s32.totalorder %s3542_s4, %s2755_s26  ;;  %p2760_p13 = scmp.lt.u32.totalorder %s3542_s4, %s3700_s0 }
 0x67e   : > { %p2761_p0 = scmp.lt.u32.totalorder %s2759_s8, %s2755_s26  ;;  %p2763_p2 = scmp.lt.u32.totalorder %s2755_s26, %s3542_s4 }
 0x67f   : > { %p2757_p11 = pnand %p2756_p10, %p2961_p5 }
 0x680   : > { %p2762_p1 = por %p2761_p0, %p2760_p13 }
 0x681   : > { %p2758_p12 = pneg %p2757_p11 }
 0x682   : > { %p2764_p3 = por %p2763_p2, %p2762_p1 }
 0x684   : > { %p2765_p4 = pnand %p2764_p3, %p2758_p12 }
 0x686   : > { %2768 = shalt.err (!%p2765_p4)
}
 0x687   : > { %2668 = dma.vmem_to_hbm [thread:$0]  (%p2961_p5), %s3545_s2, 2048, %s3542_s4, %s2045_s6, %s2810_s24, %s2810_s24, %s2811_s29  }
 0x688   : > { %s3701_s1 = sld [smem:[#allocation23_spill]]  ;;  %s3702_s22 = sld [smem:[#allocation24_spill]] }
 0x68e   : > { %v2318_v33 = vld [vmem:[%s3701_s1] ss:$0 sm:$0xff]  ;;  %s3581_s19 = scalar_lea.vmem %s3702_s22, %s3002_s27 }
 0x71c   : > { %v2645_v34 = vpop.f32.mrb[44].mxu1 }
 0x71d   : > { %v1964_v35 = vadd.f32 %v2645_v34, %v2318_v33  ;;  %v1955_v36 = vpop.f32.mrb[45].mxu1 }
 0x71e   : > { %v1956_v37 = vadd.f32 %v2318_v33, %v1955_v36  ;;  %v2646_v38 = vpop.f32.mrb[46].mxu1 }
 0x71f   : > { %2020 = vst.msk [vmem:[%s3581_s19 + $0x10] sm:$0xff] %vm753_vm0, %v1964_v35  ;;  %v1967_v39 = vadd.f32 %v2646_v38, %v2318_v33  ;;  %v1958_v40 = vpop.f32.mrb[47].mxu1 }
 0x720   : > { %2018 = vst.msk [vmem:[%s3581_s19] sm:$0xff] %vm753_vm0, %v1956_v37  ;;  %v1959_v41 = vadd.f32 %v2318_v33, %v1958_v40 }
 0x721   : > { %2021 = vst.msk [vmem:[%s3581_s19 + $0x18] sm:$0xff] %vm753_vm0, %v1967_v39 }
 0x722   : > { %2019 = vst.msk [vmem:[%s3581_s19 + $0x8] sm:$0xff] %vm753_vm0, %v1959_v41 }
 0x724   : > { %v2649_v42 = vpop.f32.mrb[48].mxu1 }
 0x725   : > { %v1980_v43 = vadd.f32 %v2649_v42, %v2318_v33  ;;  %v1971_v44 = vpop.f32.mrb[49].mxu1 }
 0x726   : > { %v1972_v45 = vadd.f32 %v2318_v33, %v1971_v44  ;;  %v2650_v46 = vpop.f32.mrb[50].mxu1 }
 0x727   : > { %2024 = vst.msk [vmem:[%s3581_s19 + $0x30] sm:$0xff] %vm753_vm0, %v1980_v43  ;;  %v1983_v47 = vadd.f32 %v2650_v46, %v2318_v33  ;;  %v1974_v48 = vpop.f32.mrb[51].mxu1 }
 0x728   : > { %2022 = vst.msk [vmem:[%s3581_s19 + $0x20] sm:$0xff] %vm753_vm0, %v1972_v45  ;;  %v1975_v49 = vadd.f32 %v2318_v33, %v1974_v48 }
 0x729   : > { %2025 = vst.msk [vmem:[%s3581_s19 + $0x38] sm:$0xff] %vm753_vm0, %v1983_v47 }
 0x72a   : > { %2023 = vst.msk [vmem:[%s3581_s19 + $0x28] sm:$0xff] %vm753_vm0, %v1975_v49 }
 0x72c   : > { %v2653_v50 = vpop.f32.mrb[52].mxu1 }
 0x72d   : > { %v1996_v51 = vadd.f32 %v2653_v50, %v2318_v33  ;;  %v1987_v52 = vpop.f32.mrb[53].mxu1 }
 0x72e   : > { %v1988_v53 = vadd.f32 %v2318_v33, %v1987_v52  ;;  %v2654_v54 = vpop.f32.mrb[54].mxu1 }
 0x72f   : > { %2028 = vst.msk [vmem:[%s3581_s19 + $0x50] sm:$0xff] %vm753_vm0, %v1996_v51  ;;  %v1999_v55 = vadd.f32 %v2654_v54, %v2318_v33  ;;  %v1990_v56 = vpop.f32.mrb[55].mxu1 }
 0x730   : > { %2026 = vst.msk [vmem:[%s3581_s19 + $0x40] sm:$0xff] %vm753_vm0, %v1988_v53  ;;  %v1991_v57 = vadd.f32 %v2318_v33, %v1990_v56 }
 0x731   : > { %2029 = vst.msk [vmem:[%s3581_s19 + $0x58] sm:$0xff] %vm753_vm0, %v1999_v55 }
 0x732   : > { %2027 = vst.msk [vmem:[%s3581_s19 + $0x48] sm:$0xff] %vm753_vm0, %v1991_v57 }
 0x734   : > { %v2657_v58 = vpop.f32.mrb[56].mxu1 }
 0x735   : > { %v2012_v59 = vadd.f32 %v2657_v58, %v2318_v33  ;;  %v2003_v60 = vpop.f32.mrb[57].mxu1 }
 0x736   : > { %v2004_v61 = vadd.f32 %v2318_v33, %v2003_v60  ;;  %v2658_v62 = vpop.f32.mrb[58].mxu1 }
 0x737   : > { %2032 = vst.msk [vmem:[%s3581_s19 + $0x70] sm:$0xff] %vm753_vm0, %v2012_v59  ;;  %v2015_v63 = vadd.f32 %v2658_v62, %v2318_v33  ;;  %v2006_v0 = vpop.f32.mrb[59].mxu1 }
 0x738   : > { %2030 = vst.msk [vmem:[%s3581_s19 + $0x60] sm:$0xff] %vm753_vm0, %v2004_v61  ;;  %v2007_v1 = vadd.f32 %v2318_v33, %v2006_v0 }
 0x739   : > { %2033 = vst.msk [vmem:[%s3581_s19 + $0x78] sm:$0xff] %vm753_vm0, %v2015_v63 }
 0x73a   : > { %2031 = vst.msk [vmem:[%s3581_s19 + $0x68] sm:$0xff] %vm753_vm0, %v2007_v1 }
 0x73b PF: > { %s3703_s6 = sld [smem:[#allocation10_spill]]  ;;  %s3704_s5 = sld [smem:[#allocation8_spill]] }
 0x741   : > { %p2678_p5 = scmp.ge.s32.totalorder %s3703_s6, 2  ;;  %s2119_s16 = sand.u32 1, %s3704_s5  }
 0x742   : > { %s2120_s24 = scalar_lea.sflag [#allocation3], %s2119_s16 }
 0x743   : > { %p2672_p7 = pnand %p2678_p5, %p2965_p6 }
 0x745   : > { %2786 = dma.done.wait (!%p2672_p7), %s2120_s24, 2048  }
 0x746   : > { %2788 = vsyncadd (!%p2672_p7), %s2120_s24, 4294965248  ;;  %s2129_s29 = scalar_lea.sflag [#allocation5], %s2119_s16 }
 0x747   : > { %2790 = dma.done.wait (!%p2672_p7), %s2129_s29, 2048  }
 0x748   : > { %2792 = vsyncadd (!%p2672_p7), %s2129_s29, 4294965248  ;;  %s3706_s27 = sld [smem:[#allocation11_spill]]  ;;  %s3707_s4 = sld [smem:[#allocation9_spill]] }
 0x749   : > { %s3708_s26 = sld [smem:[#allocation12_spill]]  ;;  %s3709_s2 = smov %s2799_s25 }
 0x74e   : > { %p35_p8 = scmp.ge.s32.totalorder %s3706_s27, 4   ;;  %s3710_s25 = smov %s3707_s4 }
 0x750   :  { %37 = sbr.rel (!%p35_p8) target bundleno = 18 (0x12), region = 176 }
 0x757   :  { %2150 = vsyncpa [#allocation3], 1 }
 0x758   :  { %2152 = vsyncpa [#allocation3 + $0x1], 1 }
 0x759   :  { %2153 = vsyncpa [#allocation5], 1 }
 0x75a   :  { %2155 = vsyncpa [#allocation5 + $0x1], 1 }

</bundles_post_ra>
